<compile_context>
chip_gen: v5e
topology: v5e:2x2
jax: 0.10.0
libtpu: 0.0.40
codegen_flags: <defaults>
</compile_context>

<pallas_src>
import functools

import numpy as np
import jax
import jax.numpy as jnp
from jax.experimental import pallas as pl
from jax.experimental.pallas import tpu as pltpu


_VMEM_LIMIT_BYTES = 32 * 1024 * 1024   # explicit scoped-VMEM budget: >= every
                                       # generation's default, far above the
                                       # ~5 MiB actually used, < v7x's 64 MiB.
_MAX_TM = 512                          # M tile (perf review: 256-512)
_MAX_TK = 512                          # K tile (256+ matches v6e/v7x MXU)
_MAX_TN = 256                          # N tile


def _round_up(x, m):
    return ((x + m - 1) // m) * m


def _m_tiling(m):
    """Split M into n_i tiles of size tm (multiple of 8, <= _MAX_TM)."""
    m8 = _round_up(max(m, 1), 8)
    n_i = -(-m8 // _MAX_TM)
    tm = _round_up(-(-m8 // n_i), 8)
    return tm, n_i, tm * n_i


# ----------------------------------------------------------------------------
# Pallas kernel 1: tiled matmul + bias + LeakyReLU, optional fused BN stats
# ----------------------------------------------------------------------------
def _conv_matmul_body(a_ref, b_ref, bias_ref, o_ref, stat_ref, *,
                      leaky_slope, compute_stats):
    k = pl.program_id(2)

    # The f32 output block is resident across the k (reduction) axis, so it is
    # used directly as the accumulator (no separate VMEM scratch).
    @pl.when(k == 0)
    def _():
        o_ref[...] = jnp.zeros_like(o_ref)

    o_ref[...] += jnp.dot(a_ref[...], b_ref[...],
                          preferred_element_type=jnp.float32)

    @pl.when(k == pl.num_programs(2) - 1)
    def _():
        r = o_ref[...] + bias_ref[...]
        if leaky_slope is not None:
            r = jnp.where(r >= 0.0, r, leaky_slope * r)
        o_ref[...] = r
        if compute_stats:
            # Fused BatchNorm statistics: per-channel partial sum / sum-of-sq
            # for this M tile.  Padded (zero) A rows produce conv output 0
            # (BN layers have no bias), so they contribute nothing; the true
            # row count is divided out in the wrapper.
            s = jnp.sum(r, axis=0, keepdims=True)
            ss = jnp.sum(r * r, axis=0, keepdims=True)
            fill = jnp.zeros((6, r.shape[1]), jnp.float32)
            stat_ref[...] = jnp.concatenate([s, ss, fill], axis=0)


def _conv_matmul(A, B, bias, *, leaky_slope=None, compute_stats=False):
    """out = A @ B (+ bias) (+ LeakyReLU), optional fused per-column stats.

    A: (M, K) f32, B: (K, Nc) f32, bias: (Nc,) f32 or None.
    Returns (out_padded (Mp, Np) f32, stats (n_i*8, Np) f32 or None).
    """
    M, K = A.shape
    Nc = B.shape[1]

    tm, n_i, Mp = _m_tiling(M)

    # K tiling: never pad K.  Non-multiple-of-128 K (head layer, K = 4*4*3 = 48)
    # is a single full-K block, so no cycles/DMA are wasted on zero padding.
    if K % 128 == 0:
        tk = next(t for t in (_MAX_TK, 256, 128) if K % t == 0)
    else:
        tk = K
    n_k = K // tk

    # N tiling: no padding for real channel counts (>= 8); only the tiny
    # 1-channel final conv is padded to a single 128-lane block (accepted).
    if Nc % 128 == 0:
        Np, tn = Nc, (_MAX_TN if Nc % _MAX_TN == 0 else 128)
    elif Nc >= 8:
        Np, tn = Nc, Nc
    else:
        Np, tn = 128, 128
    n_j = Np // tn

    Ap = A if Mp == M else jnp.pad(A, ((0, Mp - M), (0, 0)))
    Bp = B if Np == Nc else jnp.pad(B, ((0, 0), (0, Np - Nc)))
    if bias is None:
        bias = jnp.zeros((Nc,), jnp.float32)
    bias = bias.astype(jnp.float32)
    biasp = (bias if Np == Nc else jnp.pad(bias, (0, Np - Nc))).reshape(1, Np)

    in_specs = [
        pl.BlockSpec((tm, tk), lambda i, j, k: (i, k)),
        pl.BlockSpec((tk, tn), lambda i, j, k: (k, j)),
        pl.BlockSpec((1, tn), lambda i, j, k: (0, j)),
    ]

    if compute_stats:
        out_shape = (jax.ShapeDtypeStruct((Mp, Np), jnp.float32),
                     jax.ShapeDtypeStruct((n_i * 8, Np), jnp.float32))
        out_specs = (pl.BlockSpec((tm, tn), lambda i, j, k: (i, j)),
                     pl.BlockSpec((8, tn), lambda i, j, k: (i, j)))

        def kernel(a_ref, b_ref, bias_ref, o_ref, stat_ref):
            _conv_matmul_body(a_ref, b_ref, bias_ref, o_ref, stat_ref,
                              leaky_slope=leaky_slope, compute_stats=True)
    else:
        out_shape = jax.ShapeDtypeStruct((Mp, Np), jnp.float32)
        out_specs = pl.BlockSpec((tm, tn), lambda i, j, k: (i, j))

        def kernel(a_ref, b_ref, bias_ref, o_ref):
            _conv_matmul_body(a_ref, b_ref, bias_ref, o_ref, None,
                              leaky_slope=leaky_slope, compute_stats=False)

    cost = pl.CostEstimate(
        flops=2 * Mp * K * Np,
        transcendentals=0,
        bytes_accessed=4 * (Mp * K + K * Np + 2 * Mp * Np))

    res = pl.pallas_call(
        kernel,
        out_shape=out_shape,
        grid_spec=pltpu.PrefetchScalarGridSpec(
            num_scalar_prefetch=0,
            grid=(n_i, n_j, n_k),               # k (reduction) innermost
            in_specs=in_specs,
            out_specs=out_specs),
        compiler_params=pltpu.CompilerParams(
            dimension_semantics=("parallel", "parallel", "arbitrary"),
            vmem_limit_bytes=_VMEM_LIMIT_BYTES),
        cost_estimate=cost,
    )(Ap, Bp, biasp)

    if compute_stats:
        return res[0], res[1]
    return res, None


# ----------------------------------------------------------------------------
# Pallas kernel 2: tiled per-channel scale + shift (BatchNorm normalize step)
# ----------------------------------------------------------------------------
def _scale_shift_kernel(x_ref, s_ref, b_ref, o_ref):
    o_ref[...] = x_ref[...] * s_ref[...] + b_ref[...]


def _scale_shift(x2d, scale, shift, *, n_i):
    Mp, C = x2d.shape
    tm = Mp // n_i
    return pl.pallas_call(
        _scale_shift_kernel,
        out_shape=jax.ShapeDtypeStruct((Mp, C), jnp.float32),
        grid_spec=pltpu.PrefetchScalarGridSpec(
            num_scalar_prefetch=0,
            grid=(n_i,),
            in_specs=[pl.BlockSpec((tm, C), lambda i: (i, 0)),
                      pl.BlockSpec((1, C), lambda i: (0, 0)),
                      pl.BlockSpec((1, C), lambda i: (0, 0))],
            out_specs=pl.BlockSpec((tm, C), lambda i: (i, 0))),
        compiler_params=pltpu.CompilerParams(
            dimension_semantics=("parallel",),
            vmem_limit_bytes=_VMEM_LIMIT_BYTES),
    )(x2d, scale.reshape(1, C).astype(jnp.float32),
      shift.reshape(1, C).astype(jnp.float32))


# ----------------------------------------------------------------------------
# im2col glue (single fused XLA patches op) + weight-matrix construction
# ----------------------------------------------------------------------------
@functools.lru_cache(maxsize=None)
def _patch_col_perm(kh, kw, cin):
    """Column permutation used by lax.conv_general_dilated_patches, determined
    from a tiny concrete probe so the weight ordering is correct by
    construction.  perm[p] = (di*kw + dj)*cin + ci for output column p."""
    probe = np.arange(kh * kw * cin, dtype=np.float32).reshape(1, kh, kw, cin)
    cols = jax.lax.conv_general_dilated_patches(
        jnp.asarray(probe), (kh, kw), (1, 1), 'VALID',
        dimension_numbers=('NHWC', 'HWIO', 'NHWC'),
        precision=jax.lax.Precision.HIGHEST)
    perm = [int(v) for v in np.asarray(jax.device_get(cols)).reshape(-1).round()]
    assert sorted(perm) == list(range(kh * kw * cin))
    return tuple(perm)


def _im2col(x_nhwc, kh, kw, stride, pad):
    # TODO(synk): the im2col tensor is still materialized in HBM (kh*kw x
    # inflation); next step is reading A tiles straight from the padded NHWC
    # activation inside the kernel (tap-decomposed K axis / manual DMA).
    N, H, W, C = x_nhwc.shape
    Ho = (H + 2 * pad - kh) // stride + 1
    Wo = (W + 2 * pad - kw) // stride + 1
    patches = jax.lax.conv_general_dilated_patches(
        x_nhwc, (kh, kw), (stride, stride), ((pad, pad), (pad, pad)),
        dimension_numbers=('NHWC', 'HWIO', 'NHWC'),
        precision=jax.lax.Precision.HIGHEST)      # keep activations exact f32
    return patches.reshape(N * Ho * Wo, kh * kw * C), Ho, Wo


def _weight_matrix(w_oihw):
    """(Cout, Cin, kh, kw) -> (kh*kw*Cin, Cout), rows matching im2col columns."""
    cout, cin, kh, kw = w_oihw.shape
    b_can = jnp.transpose(w_oihw, (2, 3, 1, 0)).reshape(kh * kw * cin, cout)
    perm = jnp.asarray(_patch_col_perm(kh, kw, cin), dtype=jnp.int32)
    return b_can[perm, :]


# ----------------------------------------------------------------------------
# Per-layer wrappers
# ----------------------------------------------------------------------------
def conv2d_pallas(x_nhwc, w_oihw, bias, *, stride, pad, leaky_slope=None):
    """Conv2d (PyTorch OIHW weights) + optional bias + optional LeakyReLU."""
    N = x_nhwc.shape[0]
    cout = w_oihw.shape[0]
    kh, kw = w_oihw.shape[2], w_oihw.shape[3]
    A, Ho, Wo = _im2col(x_nhwc, kh, kw, stride, pad)
    B = _weight_matrix(w_oihw)
    out_p, _ = _conv_matmul(A, B, bias, leaky_slope=leaky_slope,
                            compute_stats=False)
    M = N * Ho * Wo
    return out_p[:M, :cout].reshape(N, Ho, Wo, cout)


def conv2d_bn_pallas(x_nhwc, w_oihw, gamma, beta, *, stride, pad, eps=1e-5):
    """Conv2d (no bias) + BatchNorm2d (training-mode batch stats, biased var).
    The BN reduction is fused into the conv matmul epilogue."""
    N = x_nhwc.shape[0]
    cout = w_oihw.shape[0]
    kh, kw = w_oihw.shape[2], w_oihw.shape[3]
    A, Ho, Wo = _im2col(x_nhwc, kh, kw, stride, pad)
    B = _weight_matrix(w_oihw)
    out_p, stats = _conv_matmul(A, B, None, leaky_slope=None,
                                compute_stats=True)
    M = N * Ho * Wo

    n_i = stats.shape[0] // 8
    st = stats.reshape(n_i, 8, out_p.shape[1])
    ch_sum = jnp.sum(st[:, 0, :], axis=0)
    ch_sqsum = jnp.sum(st[:, 1, :], axis=0)
    mean = ch_sum / M
    # Single-pass E[x^2] - mean^2 (clamped >= 0); fine in f32 at these scales.
    var = jnp.maximum(ch_sqsum / M - mean * mean, 0.0)
    scale = gamma.astype(jnp.float32) * jax.lax.rsqrt(var + eps)
    shift = beta.astype(jnp.float32) - mean * scale

    y_p = _scale_shift(out_p, scale, shift, n_i=n_i)
    return y_p[:M, :cout].reshape(N, Ho, Wo, cout)


# ----------------------------------------------------------------------------
# Parameter init + forward (mirrors NLayerDiscriminator_v1.__init__ / .forward)
# ----------------------------------------------------------------------------
def init_params(key, input_nc=3, ndf=64, n_layers=3):
    def conv_w(key, cout, cin, k):
        fan_in = cin * k * k
        return (jax.random.normal(key, (cout, cin, k, k), jnp.float32)
                / jnp.sqrt(fan_in))

    keys = jax.random.split(key, 2 * (n_layers + 2))
    ki = iter(range(len(keys)))
    params = {}
    kw = 4

    # head: Conv(input_nc -> ndf, s=2) with bias, + LeakyReLU(0.2)
    params["head"] = {
        "w": conv_w(keys[next(ki)], ndf, input_nc, kw),
        "b": 0.01 * jax.random.normal(keys[next(ki)], (ndf,), jnp.float32),
    }

    # body: (n_layers - 1) blocks of Conv(s=2, bias=False) + BatchNorm2d
    body = []
    nf_mult = 1
    for n in range(1, n_layers):
        nf_mult_prev = nf_mult
        nf_mult = min(2 ** n, 8)
        cout = ndf * nf_mult
        body.append({
            "w": conv_w(keys[next(ki)], cout, ndf * nf_mult_prev, kw),
            "gamma": jnp.ones((cout,), jnp.float32),
            "beta": jnp.zeros((cout,), jnp.float32),
        })
    params["body"] = body

    # beforlast: Conv(s=1, bias=False) + BatchNorm2d
    nf_mult_prev = nf_mult
    nf_mult = min(2 ** n_layers, 8)
    cout = ndf * nf_mult
    params["beforlast"] = {
        "w": conv_w(keys[next(ki)], cout, ndf * nf_mult_prev, kw),
        "gamma": jnp.ones((cout,), jnp.float32),
        "beta": jnp.zeros((cout,), jnp.float32),
    }

    # final: Conv(-> 1, s=1) with bias
    params["final"] = {
        "w": conv_w(keys[next(ki)], 1, cout, kw),
        "b": 0.01 * jax.random.normal(keys[next(ki)], (1,), jnp.float32),
    }
    return params


def nlayer_discriminator_v1_forward(params, x_nchw):
    # External layout NCHW (PyTorch); NHWC internally.
    x = jnp.transpose(x_nchw, (0, 2, 3, 1))
    features = []

    # head: Conv(s=2) + LeakyReLU(0.2), fused in the matmul epilogue
    f = conv2d_pallas(x, params["head"]["w"], params["head"]["b"],
                      stride=2, pad=1, leaky_slope=0.2)
    features.append(f)

    # body: Conv(s=2, no bias) + BatchNorm2d (stats fused in conv epilogue)
    for layer in params["body"]:
        f = conv2d_bn_pallas(f, layer["w"], layer["gamma"], layer["beta"],
                             stride=2, pad=1)
        features.append(f)

    # beforlast: Conv(s=1, no bias) + BatchNorm2d
    bl = conv2d_bn_pallas(f, params["beforlast"]["w"],
                          params["beforlast"]["gamma"],
                          params["beforlast"]["beta"], stride=1, pad=1)

    # final: Conv(s=1, bias) -> 1 channel (Cout padded to one 128-lane block
    # inside the generic matmul; the layer is tiny, waste is negligible).
    final = conv2d_pallas(bl, params["final"]["w"], params["final"]["b"],
                          stride=1, pad=1)

    features = [jnp.transpose(t, (0, 3, 1, 2)) for t in features]
    final = jnp.transpose(final, (0, 3, 1, 2))
    return features, final


# ----------------------------------------------------------------------------
# Pure-XLA reference (verification only; the forward above uses Pallas)
# ----------------------------------------------------------------------------
def _reference_forward(params, x_nchw, eps=1e-5):
    def conv(x, w, b, stride, pad):
        y = jax.lax.conv_general_dilated(
            x, w, (stride, stride), ((pad, pad), (pad, pad)),
            dimension_numbers=('NCHW', 'OIHW', 'NCHW'),
            precision=jax.lax.Precision.HIGHEST)
        if b is not None:
            y = y + b.reshape(1, -1, 1, 1)
        return y

    def bn(x, gamma, beta):
        mean = jnp.mean(x, axis=(0, 2, 3), keepdims=True)
        var = jnp.mean((x - mean) ** 2, axis=(0, 2, 3), keepdims=True)
        xhat = (x - mean) * jax.lax.rsqrt(var + eps)
        return xhat * gamma.reshape(1, -1, 1, 1) + beta.reshape(1, -1, 1, 1)

    feats = []
    f = conv(x_nchw, params["head"]["w"], params["head"]["b"], 2, 1)
    f = jnp.where(f >= 0.0, f, 0.2 * f)
    feats.append(f)
    for layer in params["body"]:
        f = bn(conv(f, layer["w"], None, 2, 1), layer["gamma"], layer["beta"])
        feats.append(f)
    bl = bn(conv(f, params["beforlast"]["w"], None, 1, 1),
            params["beforlast"]["gamma"], params["beforlast"]["beta"])
    fin = conv(bl, params["final"]["w"], params["final"]["b"], 1, 1)
    return feats, fin


def _assert_close(name, got, want, tol=2e-3):
    err = float(jnp.max(jnp.abs(got - want)))
    ref = float(jnp.max(jnp.abs(want)))
    assert err <= tol * (1.0 + ref), (
        f"{name}: max abs err {err:.3e} vs reference magnitude {ref:.3e}")


if __name__ == "__main__":
    key = jax.random.PRNGKey(0)
    k_param, k_x = jax.random.split(key)

    # Small shapes consistent with the module: input_nc=3, ndf=8, n_layers=3.
    input_nc, ndf, n_layers = 3, 8, 3
    params = init_params(k_param, input_nc=input_nc, ndf=ndf, n_layers=n_layers)

    x = jax.random.normal(k_x, (2, input_nc, 32, 32), jnp.float32)

    features, final = nlayer_discriminator_v1_forward(params, x)
    final = jax.block_until_ready(final)
    features = [jax.block_until_ready(f) for f in features]

    # expected: features NCHW [(2,8,16,16), (2,16,8,8), (2,32,4,4)], final (2,1,2,2)
    assert features[0].shape == (2, ndf, 16, 16)
    assert features[1].shape == (2, 2 * ndf, 8, 8)
    assert features[2].shape == (2, 4 * ndf, 4, 4)
    assert final.shape == (2, 1, 2, 2)

    # Numerical check against a plain-XLA reference of the same module.
    ref_feats, ref_final = _reference_forward(params, x)
    for i, (got, want) in enumerate(zip(features, ref_feats)):
        _assert_close(f"feature[{i}]", got, want)
    _assert_close("final", final, ref_final)

    print("KERNEL_OK")
</pallas_src>

<mosaic_0001>
module attributes {stable_mosaic.version = 11 : i64} {
  func.func @kernel(%arg0: i32, %arg1: i32, %arg2: i32, %arg3: memref<512x48xf32, #tpu.memory_space<vmem>>, %arg4: memref<48x8xf32, #tpu.memory_space<vmem>>, %arg5: memref<1x8xf32, #tpu.memory_space<vmem>>, %arg6: memref<512x8xf32, #tpu.memory_space<vmem>>) attributes {dimension_semantics = [#tpu.dimension_semantics<parallel>, #tpu.dimension_semantics<parallel>, #tpu.dimension_semantics<arbitrary>], iteration_bounds = array<i64: 1, 1, 1>, scalar_prefetch = 0 : i64, scratch_operands = 0 : i64, tpu.core_type = #tpu.core_type<tc>, window_params = [{transform_indices = @transform_0, window_bounds = array<i64: 512, 48>}, {transform_indices = @transform_1, window_bounds = array<i64: 48, 8>}, {transform_indices = @transform_2, window_bounds = array<i64: 1, 8>}, {transform_indices = @transform_3, window_bounds = array<i64: 512, 8>}]} {
    %c0_i32 = arith.constant 0 : i32
    %0 = arith.cmpi eq, %arg2, %c0_i32 : i32
    %1 = arith.extui %0 : i1 to i32
    %c0_i32_0 = arith.constant 0 : i32
    %2 = arith.cmpi ne, %1, %c0_i32_0 : i32
    scf.if %2 {
      %cst_10 = arith.constant 0.000000e+00 : f32
      %12 = vector.broadcast %cst_10 : f32 to vector<512x8xf32>
      %c0_11 = arith.constant 0 : index
      %c0_12 = arith.constant 0 : index
      %13 = vector.load %arg6[%c0_11, %c0_12] : memref<512x8xf32, #tpu.memory_space<vmem>>, vector<512x8xf32>
      tpu.vector_store %arg6[%c0_11, %c0_12], %12 {strides = array<i32>} : memref<512x8xf32, #tpu.memory_space<vmem>>, vector<512x8xf32>,
    } else {
    }
    %c0 = arith.constant 0 : index
    %c0_1 = arith.constant 0 : index
    %3 = vector.load %arg6[%c0, %c0_1] : memref<512x8xf32, #tpu.memory_space<vmem>>, vector<512x8xf32>
    %c0_2 = arith.constant 0 : index
    %c0_3 = arith.constant 0 : index
    %4 = vector.load %arg3[%c0_2, %c0_3] : memref<512x48xf32, #tpu.memory_space<vmem>>, vector<512x48xf32>
    %c0_4 = arith.constant 0 : index
    %c0_5 = arith.constant 0 : index
    %5 = vector.load %arg4[%c0_4, %c0_5] : memref<48x8xf32, #tpu.memory_space<vmem>>, vector<48x8xf32>
    %cst = arith.constant dense<0.000000e+00> : vector<512x8xf32>
    %6 = tpu.matmul %4, %5, %cst {dimension_numbers = #tpu.dot_dimension_numbers<[1], [0], [0], [1], [0, 0, 1, 1], [], []>} : vector<512x48xf32>, vector<48x8xf32>, vector<512x8xf32> -> vector<512x8xf32>
    %7 = arith.addf %3, %6 : vector<512x8xf32>
    %c0_6 = arith.constant 0 : index
    %c0_7 = arith.constant 0 : index
    %8 = vector.load %arg6[%c0_6, %c0_7] : memref<512x8xf32, #tpu.memory_space<vmem>>, vector<512x8xf32>
    tpu.vector_store %arg6[%c0_6, %c0_7], %7 {strides = array<i32>} : memref<512x8xf32, #tpu.memory_space<vmem>>, vector<512x8xf32>,
    %c0_i32_8 = arith.constant 0 : i32
    %9 = arith.cmpi eq, %arg2, %c0_i32_8 : i32
    %10 = arith.extui %9 : i1 to i32
    %c0_i32_9 = arith.constant 0 : i32
    %11 = arith.cmpi ne, %10, %c0_i32_9 : i32
    scf.if %11 {
      %c0_10 = arith.constant 0 : index
      %c0_11 = arith.constant 0 : index
      %12 = vector.load %arg6[%c0_10, %c0_11] : memref<512x8xf32, #tpu.memory_space<vmem>>, vector<512x8xf32>
      %c0_12 = arith.constant 0 : index
      %c0_13 = arith.constant 0 : index
      %13 = vector.load %arg5[%c0_12, %c0_13] : memref<1x8xf32, #tpu.memory_space<vmem>>, vector<1x8xf32>
      %14 = vector.broadcast %13 : vector<1x8xf32> to vector<512x8xf32>
      %15 = arith.addf %12, %14 : vector<512x8xf32>
      %cst_14 = arith.constant 0.000000e+00 : f32
      %16 = vector.broadcast %cst_14 : f32 to vector<512x8xf32>
      %17 = arith.cmpf oge, %15, %16 : vector<512x8xf32>
      %cst_15 = arith.constant 2.000000e-01 : f32
      %18 = vector.broadcast %cst_15 : f32 to vector<512x8xf32>
      %19 = arith.mulf %18, %15 : vector<512x8xf32>
      %20 = arith.select %17, %15, %19 : vector<512x8xi1>, vector<512x8xf32>
      %c0_16 = arith.constant 0 : index
      %c0_17 = arith.constant 0 : index
      %21 = vector.load %arg6[%c0_16, %c0_17] : memref<512x8xf32, #tpu.memory_space<vmem>>, vector<512x8xf32>
      tpu.vector_store %arg6[%c0_16, %c0_17], %20 {strides = array<i32>} : memref<512x8xf32, #tpu.memory_space<vmem>>, vector<512x8xf32>,
    } else {
    }
    return
  }
  func.func @transform_0(%arg0: i32, %arg1: i32, %arg2: i32) -> (i32, i32) {
    %c0_i32 = arith.constant 0 : i32
    return %arg0, %arg2 : i32, i32
  }
  func.func @transform_1(%arg0: i32, %arg1: i32, %arg2: i32) -> (i32, i32) {
    %c0_i32 = arith.constant 0 : i32
    return %arg2, %arg1 : i32, i32
  }
  func.func @transform_2(%arg0: i32, %arg1: i32, %arg2: i32) -> (i32, i32) {
    %c0_i32 = arith.constant 0 : i32
    %c0_i32_0 = arith.constant 0 : i32
    return %c0_i32, %arg1 : i32, i32
  }
  func.func @transform_3(%arg0: i32, %arg1: i32, %arg2: i32) -> (i32, i32) {
    %c0_i32 = arith.constant 0 : i32
    return %arg0, %arg1 : i32, i32
  }
}

</mosaic_0001>

<bundles_post_ra>
// kernel: tpu_custom_call.1
= control target key start
LH: loop header
LB: loop body
LE: loop exit
PB: predicated region body
PF: predicated region fallthrough
CT: control target
= control target key end

     0   :  { %vm217_vm0 = vcmask 392192   ;;  %vm18_vm1 = vcmask 64512   ;;  %v1228_v54 = vmov 0.0   ;;  %s2906_s1 = inlined_call_operand.vmem [shape: f32[48,8], index: 1, kind: input, shape index: {}]   ;;  %s2907_s0 = inlined_call_operand.vmem [shape: f32[512,48], index: 0, kind: input, shape index: {}]   ;;  %s2908_s2 = inlined_call_operand.vmem [shape: f32[1,8], index: 2, kind: input, shape index: {}]   ;;  %s2909_s3 = inlined_call_operand.vmem [shape: f32[512,8], index: 3, kind: output, shape index: {}]  }
   0x1   :  { %v216_v0 = vld [vmem:[%s2906_s1 + $0x28] sm:$0xff]  ;;  %v215_v1 = vld [vmem:[%s2906_s1 + $0x20] sm:$0xff]  ;;  %v214_v2 = vld [vmem:[%s2906_s1 + $0x18] sm:$0xff]  ;;  %19 = vst.msk [vmem:[%s2909_s3] sm:$0xff] %vm18_vm1, %v1228_v54 }
   0x2   :  { %1208 = vmatpush.msra.mxu2 %v216_v0  ;;  %1209 = vmatpush.msra.mxu3 %v216_v0  ;;  %v213_v3 = vld [vmem:[%s2906_s1 + $0x10] sm:$0xff]  ;;  %v212_v4 = vld [vmem:[%s2906_s1 + $0x8] sm:$0xff]  ;;  %v211_v5 = vld [vmem:[%s2906_s1] sm:$0xff]  ;;  %20 = vst.msk [vmem:[%s2909_s3 + $0x8] sm:$0xff] %vm18_vm1, %v1228_v54 }
   0x3   :  { %420 = vmatpush.msra.mxu0 %v216_v0  ;;  %1207 = vmatpush.msra.mxu1 %v216_v0  ;;  %v179_v6 = vld [vmem:[%s2907_s0 + $0x100] sm:$0xff]  ;;  %v180_v10 = vld [vmem:[%s2907_s0 + $0x108] sm:$0xff]  ;;  %v181_v14 = vld [vmem:[%s2907_s0 + $0x110] sm:$0xff]  ;;  %21 = vst.msk [vmem:[%s2909_s3 + $0x10] sm:$0xff] %vm18_vm1, %v1228_v54 }
   0x4   :  { %1211 = vmatpush.msra.mxu2 %v215_v1  ;;  %1212 = vmatpush.msra.mxu3 %v215_v1  ;;  %v195_v7 = vld [vmem:[%s2907_s0 + $0x180] sm:$0xff]  ;;  %v196_v11 = vld [vmem:[%s2907_s0 + $0x188] sm:$0xff]  ;;  %v197_v15 = vld [vmem:[%s2907_s0 + $0x190] sm:$0xff]  ;;  %22 = vst.msk [vmem:[%s2909_s3 + $0x18] sm:$0xff] %vm18_vm1, %v1228_v54 }
   0x5   :  { %421 = vmatpush.msra.mxu0 %v215_v1  ;;  %1210 = vmatpush.msra.mxu1 %v215_v1  ;;  %v147_v8 = vld [vmem:[%s2907_s0] sm:$0xff]  ;;  %v148_v12 = vld [vmem:[%s2907_s0 + $0x8] sm:$0xff]  ;;  %v149_v16 = vld [vmem:[%s2907_s0 + $0x10] sm:$0xff]  ;;  %23 = vst.msk [vmem:[%s2909_s3 + $0x20] sm:$0xff] %vm18_vm1, %v1228_v54 }
   0x6   :  { %1214 = vmatpush.msra.mxu2 %v214_v2  ;;  %1215 = vmatpush.msra.mxu3 %v214_v2  ;;  %v163_v9 = vld [vmem:[%s2907_s0 + $0x80] sm:$0xff]  ;;  %v164_v13 = vld [vmem:[%s2907_s0 + $0x88] sm:$0xff]  ;;  %v165_v17 = vld [vmem:[%s2907_s0 + $0x90] sm:$0xff]  ;;  %24 = vst.msk [vmem:[%s2909_s3 + $0x28] sm:$0xff] %vm18_vm1, %v1228_v54 }
   0x7   :  { %422 = vmatpush.msra.mxu0 %v214_v2  ;;  %1213 = vmatpush.msra.mxu1 %v214_v2  ;;  %v182_v18 = vld [vmem:[%s2907_s0 + $0x118] sm:$0xff]  ;;  %v183_v22 = vld [vmem:[%s2907_s0 + $0x120] sm:$0xff]  ;;  %v184_v26 = vld [vmem:[%s2907_s0 + $0x128] sm:$0xff]  ;;  %25 = vst.msk [vmem:[%s2909_s3 + $0x30] sm:$0xff] %vm18_vm1, %v1228_v54 }
   0x8   :  { %1217 = vmatpush.msra.mxu2 %v213_v3  ;;  %1218 = vmatpush.msra.mxu3 %v213_v3  ;;  %v198_v19 = vld [vmem:[%s2907_s0 + $0x198] sm:$0xff]  ;;  %v199_v23 = vld [vmem:[%s2907_s0 + $0x1a0] sm:$0xff]  ;;  %v200_v27 = vld [vmem:[%s2907_s0 + $0x1a8] sm:$0xff]  ;;  %26 = vst.msk [vmem:[%s2909_s3 + $0x38] sm:$0xff] %vm18_vm1, %v1228_v54 }
   0x9   :  { %423 = vmatpush.msra.mxu0 %v213_v3  ;;  %1216 = vmatpush.msra.mxu1 %v213_v3  ;;  %v150_v20 = vld [vmem:[%s2907_s0 + $0x18] sm:$0xff]  ;;  %v151_v24 = vld [vmem:[%s2907_s0 + $0x20] sm:$0xff]  ;;  %v152_v28 = vld [vmem:[%s2907_s0 + $0x28] sm:$0xff]  ;;  %27 = vst.msk [vmem:[%s2909_s3 + $0x40] sm:$0xff] %vm18_vm1, %v1228_v54 }
   0xa   :  { %1220 = vmatpush.msra.mxu2 %v212_v4  ;;  %1221 = vmatpush.msra.mxu3 %v212_v4  ;;  %v166_v21 = vld [vmem:[%s2907_s0 + $0x98] sm:$0xff]  ;;  %v167_v25 = vld [vmem:[%s2907_s0 + $0xa0] sm:$0xff]  ;;  %v168_v29 = vld [vmem:[%s2907_s0 + $0xa8] sm:$0xff]  ;;  %28 = vst.msk [vmem:[%s2909_s3 + $0x48] sm:$0xff] %vm18_vm1, %v1228_v54 }
   0xb   :  { %424 = vmatpush.msra.mxu0 %v212_v4  ;;  %1219 = vmatpush.msra.mxu1 %v212_v4  ;;  %v185_v30 = vld [vmem:[%s2907_s0 + $0x130] sm:$0xff]  ;;  %v186_v34 = vld [vmem:[%s2907_s0 + $0x138] sm:$0xff]  ;;  %v187_v38 = vld [vmem:[%s2907_s0 + $0x140] sm:$0xff]  ;;  %29 = vst.msk [vmem:[%s2909_s3 + $0x50] sm:$0xff] %vm18_vm1, %v1228_v54 }
   0xc   :  { %1223 = vmatpush.msra.mxu2 %v211_v5  ;;  %1224 = vmatpush.msra.mxu3 %v211_v5  ;;  %v201_v31 = vld [vmem:[%s2907_s0 + $0x1b0] sm:$0xff]  ;;  %v202_v35 = vld [vmem:[%s2907_s0 + $0x1b8] sm:$0xff]  ;;  %v203_v39 = vld [vmem:[%s2907_s0 + $0x1c0] sm:$0xff]  ;;  %30 = vst.msk [vmem:[%s2909_s3 + $0x58] sm:$0xff] %vm18_vm1, %v1228_v54 }
   0xd   :  { %1175 = vmatmul.msk.f32.vlgmr.msra.gmra.mxu2 %vm217_vm0, %v179_v6  ;;  %1191 = vmatmul.msk.f32.vlgmr.msra.gmra.mxu3 %vm217_vm0, %v195_v7  ;;  %v153_v32 = vld [vmem:[%s2907_s0 + $0x30] sm:$0xff]  ;;  %v154_v36 = vld [vmem:[%s2907_s0 + $0x38] sm:$0xff]  ;;  %v155_v40 = vld [vmem:[%s2907_s0 + $0x40] sm:$0xff]  ;;  %31 = vst.msk [vmem:[%s2909_s3 + $0x60] sm:$0xff] %vm18_vm1, %v1228_v54 }
   0xe   :  { %425 = vmatpush.msra.mxu0 %v211_v5  ;;  %1222 = vmatpush.msra.mxu1 %v211_v5  ;;  %v169_v33 = vld [vmem:[%s2907_s0 + $0xb0] sm:$0xff]  ;;  %v170_v37 = vld [vmem:[%s2907_s0 + $0xb8] sm:$0xff]  ;;  %v171_v41 = vld [vmem:[%s2907_s0 + $0xc0] sm:$0xff]  ;;  %32 = vst.msk [vmem:[%s2909_s3 + $0x68] sm:$0xff] %vm18_vm1, %v1228_v54 }
   0xf   :  { %1143 = vmatmul.msk.f32.vlgmr.msra.gmra.mxu0 %vm217_vm0, %v147_v8  ;;  %1159 = vmatmul.msk.f32.vlgmr.msra.gmra.mxu1 %vm217_vm0, %v163_v9  ;;  %v188_v42 = vld [vmem:[%s2907_s0 + $0x148] sm:$0xff]  ;;  %v189_v46 = vld [vmem:[%s2907_s0 + $0x150] sm:$0xff]  ;;  %v190_v50 = vld [vmem:[%s2907_s0 + $0x158] sm:$0xff]  ;;  %33 = vst.msk [vmem:[%s2909_s3 + $0x70] sm:$0xff] %vm18_vm1, %v1228_v54 }
  0x10   :  { %v204_v43 = vld [vmem:[%s2907_s0 + $0x1c8] sm:$0xff]  ;;  %v205_v47 = vld [vmem:[%s2907_s0 + $0x1d0] sm:$0xff]  ;;  %v206_v51 = vld [vmem:[%s2907_s0 + $0x1d8] sm:$0xff]  ;;  %34 = vst.msk [vmem:[%s2909_s3 + $0x78] sm:$0xff] %vm18_vm1, %v1228_v54 }
  0x11   :  { %v156_v44 = vld [vmem:[%s2907_s0 + $0x48] sm:$0xff]  ;;  %v157_v48 = vld [vmem:[%s2907_s0 + $0x50] sm:$0xff]  ;;  %v158_v52 = vld [vmem:[%s2907_s0 + $0x58] sm:$0xff]  ;;  %35 = vst.msk [vmem:[%s2909_s3 + $0x80] sm:$0xff] %vm18_vm1, %v1228_v54 }
  0x12   :  { %v172_v45 = vld [vmem:[%s2907_s0 + $0xc8] sm:$0xff]  ;;  %v173_v49 = vld [vmem:[%s2907_s0 + $0xd0] sm:$0xff]  ;;  %v174_v53 = vld [vmem:[%s2907_s0 + $0xd8] sm:$0xff]  ;;  %36 = vst.msk [vmem:[%s2909_s3 + $0x88] sm:$0xff] %vm18_vm1, %v1228_v54 }
  0x13   :  { %v191_v55 = vld [vmem:[%s2907_s0 + $0x160] sm:$0xff]  ;;  %v192_v59 = vld [vmem:[%s2907_s0 + $0x168] sm:$0xff]  ;;  %37 = vst.msk [vmem:[%s2909_s3 + $0x90] sm:$0xff] %vm18_vm1, %v1228_v54  ;;  %v193_v63 = vld [vmem:[%s2907_s0 + $0x170] sm:$0xff] }
  0x14   :  { %v207_v56 = vld [vmem:[%s2907_s0 + $0x1e0] sm:$0xff]  ;;  %v208_v60 = vld [vmem:[%s2907_s0 + $0x1e8] sm:$0xff]  ;;  %v209_v0 = vld [vmem:[%s2907_s0 + $0x1f0] sm:$0xff]  ;;  %38 = vst.msk [vmem:[%s2909_s3 + $0x98] sm:$0xff] %vm18_vm1, %v1228_v54 }
  0x15   :  { %1176 = vmatmul.msk.f32.gmra.mxu2 %vm217_vm0, %v180_v10  ;;  %1192 = vmatmul.msk.f32.gmra.mxu3 %vm217_vm0, %v196_v11  ;;  %v159_v57 = vld [vmem:[%s2907_s0 + $0x60] sm:$0xff]  ;;  %v160_v61 = vld [vmem:[%s2907_s0 + $0x68] sm:$0xff]  ;;  %39 = vst.msk [vmem:[%s2909_s3 + $0xa0] sm:$0xff] %vm18_vm1, %v1228_v54  ;;  %v161_v1 = vld [vmem:[%s2907_s0 + $0x70] sm:$0xff] }
  0x16   :  { %v175_v58 = vld [vmem:[%s2907_s0 + $0xe0] sm:$0xff]  ;;  %v176_v62 = vld [vmem:[%s2907_s0 + $0xe8] sm:$0xff]  ;;  %v177_v2 = vld [vmem:[%s2907_s0 + $0xf0] sm:$0xff]  ;;  %40 = vst.msk [vmem:[%s2909_s3 + $0xa8] sm:$0xff] %vm18_vm1, %v1228_v54 }
  0x17   :  { %1144 = vmatmul.msk.f32.gmra.mxu0 %vm217_vm0, %v148_v12  ;;  %1160 = vmatmul.msk.f32.gmra.mxu1 %vm217_vm0, %v164_v13  ;;  %41 = vst.msk [vmem:[%s2909_s3 + $0xb0] sm:$0xff] %vm18_vm1, %v1228_v54  ;;  %v194_v3 = vld [vmem:[%s2907_s0 + $0x178] sm:$0xff]  ;;  %v83_v7 = vld [vmem:[%s2909_s3] sm:$0xff] }
  0x18   :  { %42 = vst.msk [vmem:[%s2909_s3 + $0xb8] sm:$0xff] %vm18_vm1, %v1228_v54  ;;  %v210_v4 = vld [vmem:[%s2907_s0 + $0x1f8] sm:$0xff]  ;;  %v1748_v13 = vld [vmem:[%s2908_s2] ss:$0 sm:$0xff] }
  0x19   :  { %43 = vst.msk [vmem:[%s2909_s3 + $0xc0] sm:$0xff] %vm18_vm1, %v1228_v54  ;;  %v162_v5 = vld [vmem:[%s2907_s0 + $0x78] sm:$0xff] }
  0x1a   :  { %44 = vst.msk [vmem:[%s2909_s3 + $0xc8] sm:$0xff] %vm18_vm1, %v1228_v54  ;;  %v178_v6 = vld [vmem:[%s2907_s0 + $0xf8] sm:$0xff] }
  0x1b   :  { %45 = vst.msk [vmem:[%s2909_s3 + $0xd0] sm:$0xff] %vm18_vm1, %v1228_v54 }
  0x1c   :  { %46 = vst.msk [vmem:[%s2909_s3 + $0xd8] sm:$0xff] %vm18_vm1, %v1228_v54 }
  0x1d   :  { %1177 = vmatmul.msk.f32.gmra.mxu2 %vm217_vm0, %v181_v14  ;;  %1193 = vmatmul.msk.f32.gmra.mxu3 %vm217_vm0, %v197_v15  ;;  %47 = vst.msk [vmem:[%s2909_s3 + $0xe0] sm:$0xff] %vm18_vm1, %v1228_v54 }
  0x1e   :  { %48 = vst.msk [vmem:[%s2909_s3 + $0xe8] sm:$0xff] %vm18_vm1, %v1228_v54 }
  0x1f   :  { %1145 = vmatmul.msk.f32.gmra.mxu0 %vm217_vm0, %v149_v16  ;;  %1161 = vmatmul.msk.f32.gmra.mxu1 %vm217_vm0, %v165_v17  ;;  %49 = vst.msk [vmem:[%s2909_s3 + $0xf0] sm:$0xff] %vm18_vm1, %v1228_v54 }
  0x20   :  { %50 = vst.msk [vmem:[%s2909_s3 + $0xf8] sm:$0xff] %vm18_vm1, %v1228_v54 }
  0x21   :  { %51 = vst.msk [vmem:[%s2909_s3 + $0x100] sm:$0xff] %vm18_vm1, %v1228_v54 }
  0x22   :  { %52 = vst.msk [vmem:[%s2909_s3 + $0x108] sm:$0xff] %vm18_vm1, %v1228_v54 }
  0x23   :  { %53 = vst.msk [vmem:[%s2909_s3 + $0x110] sm:$0xff] %vm18_vm1, %v1228_v54 }
  0x24   :  { %54 = vst.msk [vmem:[%s2909_s3 + $0x118] sm:$0xff] %vm18_vm1, %v1228_v54 }
  0x25   :  { %1178 = vmatmul.msk.f32.gmra.mxu2 %vm217_vm0, %v182_v18  ;;  %1194 = vmatmul.msk.f32.gmra.mxu3 %vm217_vm0, %v198_v19  ;;  %55 = vst.msk [vmem:[%s2909_s3 + $0x120] sm:$0xff] %vm18_vm1, %v1228_v54 }
  0x26   :  { %56 = vst.msk [vmem:[%s2909_s3 + $0x128] sm:$0xff] %vm18_vm1, %v1228_v54 }
  0x27   :  { %1146 = vmatmul.msk.f32.gmra.mxu0 %vm217_vm0, %v150_v20  ;;  %1162 = vmatmul.msk.f32.gmra.mxu1 %vm217_vm0, %v166_v21  ;;  %57 = vst.msk [vmem:[%s2909_s3 + $0x130] sm:$0xff] %vm18_vm1, %v1228_v54 }
  0x28   :  { %58 = vst.msk [vmem:[%s2909_s3 + $0x138] sm:$0xff] %vm18_vm1, %v1228_v54 }
  0x29   :  { %59 = vst.msk [vmem:[%s2909_s3 + $0x140] sm:$0xff] %vm18_vm1, %v1228_v54 }
  0x2a   :  { %60 = vst.msk [vmem:[%s2909_s3 + $0x148] sm:$0xff] %vm18_vm1, %v1228_v54 }
  0x2b   :  { %61 = vst.msk [vmem:[%s2909_s3 + $0x150] sm:$0xff] %vm18_vm1, %v1228_v54 }
  0x2c   :  { %62 = vst.msk [vmem:[%s2909_s3 + $0x158] sm:$0xff] %vm18_vm1, %v1228_v54 }
  0x2d   :  { %1179 = vmatmul.msk.f32.gmra.mxu2 %vm217_vm0, %v183_v22  ;;  %1195 = vmatmul.msk.f32.gmra.mxu3 %vm217_vm0, %v199_v23  ;;  %63 = vst.msk [vmem:[%s2909_s3 + $0x160] sm:$0xff] %vm18_vm1, %v1228_v54 }
  0x2e   :  { %64 = vst.msk [vmem:[%s2909_s3 + $0x168] sm:$0xff] %vm18_vm1, %v1228_v54 }
  0x2f   :  { %1147 = vmatmul.msk.f32.gmra.mxu0 %vm217_vm0, %v151_v24  ;;  %1163 = vmatmul.msk.f32.gmra.mxu1 %vm217_vm0, %v167_v25  ;;  %65 = vst.msk [vmem:[%s2909_s3 + $0x170] sm:$0xff] %vm18_vm1, %v1228_v54 }
  0x30   :  { %66 = vst.msk [vmem:[%s2909_s3 + $0x178] sm:$0xff] %vm18_vm1, %v1228_v54 }
  0x31   :  { %67 = vst.msk [vmem:[%s2909_s3 + $0x180] sm:$0xff] %vm18_vm1, %v1228_v54 }
  0x32   :  { %68 = vst.msk [vmem:[%s2909_s3 + $0x188] sm:$0xff] %vm18_vm1, %v1228_v54 }
  0x33   :  { %69 = vst.msk [vmem:[%s2909_s3 + $0x190] sm:$0xff] %vm18_vm1, %v1228_v54 }
  0x34   :  { %70 = vst.msk [vmem:[%s2909_s3 + $0x198] sm:$0xff] %vm18_vm1, %v1228_v54 }
  0x35   :  { %1180 = vmatmul.msk.f32.gmra.mxu2 %vm217_vm0, %v184_v26  ;;  %1196 = vmatmul.msk.f32.gmra.mxu3 %vm217_vm0, %v200_v27  ;;  %71 = vst.msk [vmem:[%s2909_s3 + $0x1a0] sm:$0xff] %vm18_vm1, %v1228_v54  ;;  %v99_v26 = vld [vmem:[%s2909_s3 + $0x80] sm:$0xff] }
  0x36   :  { %72 = vst.msk [vmem:[%s2909_s3 + $0x1a8] sm:$0xff] %vm18_vm1, %v1228_v54  ;;  %v115_v27 = vld [vmem:[%s2909_s3 + $0x100] sm:$0xff] }
  0x37   :  { %1148 = vmatmul.msk.f32.gmra.mxu0 %vm217_vm0, %v152_v28  ;;  %1164 = vmatmul.msk.f32.gmra.mxu1 %vm217_vm0, %v168_v29  ;;  %73 = vst.msk [vmem:[%s2909_s3 + $0x1b0] sm:$0xff] %vm18_vm1, %v1228_v54 }
  0x38   :  { %74 = vst.msk [vmem:[%s2909_s3 + $0x1b8] sm:$0xff] %vm18_vm1, %v1228_v54  ;;  %v131_v28 = vld [vmem:[%s2909_s3 + $0x180] sm:$0xff] }
  0x39   :  { %75 = vst.msk [vmem:[%s2909_s3 + $0x1c0] sm:$0xff] %vm18_vm1, %v1228_v54 }
  0x3a   :  { %76 = vst.msk [vmem:[%s2909_s3 + $0x1c8] sm:$0xff] %vm18_vm1, %v1228_v54 }
  0x3b   :  { %77 = vst.msk [vmem:[%s2909_s3 + $0x1d0] sm:$0xff] %vm18_vm1, %v1228_v54 }
  0x3c   :  { %78 = vst.msk [vmem:[%s2909_s3 + $0x1d8] sm:$0xff] %vm18_vm1, %v1228_v54 }
  0x3d   :  { %1181 = vmatmul.msk.f32.gmra.mxu2 %vm217_vm0, %v185_v30  ;;  %1197 = vmatmul.msk.f32.gmra.mxu3 %vm217_vm0, %v201_v31  ;;  %79 = vst.msk [vmem:[%s2909_s3 + $0x1e0] sm:$0xff] %vm18_vm1, %v1228_v54 }
  0x3e   :  { %80 = vst.msk [vmem:[%s2909_s3 + $0x1e8] sm:$0xff] %vm18_vm1, %v1228_v54 }
  0x3f   :  { %1149 = vmatmul.msk.f32.gmra.mxu0 %vm217_vm0, %v153_v32  ;;  %1165 = vmatmul.msk.f32.gmra.mxu1 %vm217_vm0, %v169_v33  ;;  %v84_v32 = vld [vmem:[%s2909_s3 + $0x8] sm:$0xff]  ;;  %81 = vst.msk [vmem:[%s2909_s3 + $0x1f0] sm:$0xff] %vm18_vm1, %v1228_v54 }
  0x40   :  { %82 = vst.msk [vmem:[%s2909_s3 + $0x1f8] sm:$0xff] %vm18_vm1, %v1228_v54  ;;  %v102_v54 = vld [vmem:[%s2909_s3 + $0x98] sm:$0xff] }
  0x45   :  { %1182 = vmatmul.msk.f32.gmra.mxu2 %vm217_vm0, %v186_v34  ;;  %1198 = vmatmul.msk.f32.gmra.mxu3 %vm217_vm0, %v202_v35  ;;  %v100_v34 = vld [vmem:[%s2909_s3 + $0x88] sm:$0xff] }
  0x47   :  { %1150 = vmatmul.msk.f32.gmra.mxu0 %vm217_vm0, %v154_v36  ;;  %1166 = vmatmul.msk.f32.gmra.mxu1 %vm217_vm0, %v170_v37  ;;  %v116_v36 = vld [vmem:[%s2909_s3 + $0x108] sm:$0xff] }
  0x4d   :  { %1183 = vmatmul.msk.f32.gmra.mxu2 %vm217_vm0, %v187_v38  ;;  %1199 = vmatmul.msk.f32.gmra.mxu3 %vm217_vm0, %v203_v39  ;;  %v132_v38 = vld [vmem:[%s2909_s3 + $0x188] sm:$0xff] }
  0x4f   :  { %1151 = vmatmul.msk.f32.gmra.mxu0 %vm217_vm0, %v155_v40  ;;  %1167 = vmatmul.msk.f32.gmra.mxu1 %vm217_vm0, %v171_v41 }
  0x55   :  { %1184 = vmatmul.msk.f32.gmra.mxu2 %vm217_vm0, %v188_v42  ;;  %1200 = vmatmul.msk.f32.gmra.mxu3 %vm217_vm0, %v204_v43  ;;  %v85_v42 = vld [vmem:[%s2909_s3 + $0x10] sm:$0xff] }
  0x57   :  { %1152 = vmatmul.msk.f32.gmra.mxu0 %vm217_vm0, %v156_v44  ;;  %1168 = vmatmul.msk.f32.gmra.mxu1 %vm217_vm0, %v172_v45  ;;  %v101_v44 = vld [vmem:[%s2909_s3 + $0x90] sm:$0xff] }
  0x5d   :  { %1185 = vmatmul.msk.f32.gmra.mxu2 %vm217_vm0, %v189_v46  ;;  %1201 = vmatmul.msk.f32.gmra.mxu3 %vm217_vm0, %v205_v47  ;;  %v117_v46 = vld [vmem:[%s2909_s3 + $0x110] sm:$0xff] }
  0x5f   :  { %1153 = vmatmul.msk.f32.gmra.mxu0 %vm217_vm0, %v157_v48  ;;  %1169 = vmatmul.msk.f32.gmra.mxu1 %vm217_vm0, %v173_v49  ;;  %v133_v48 = vld [vmem:[%s2909_s3 + $0x190] sm:$0xff] }
  0x65   :  { %1186 = vmatmul.msk.f32.gmra.mxu2 %vm217_vm0, %v190_v50  ;;  %1202 = vmatmul.msk.f32.gmra.mxu3 %vm217_vm0, %v206_v51 }
  0x67   :  { %1154 = vmatmul.msk.f32.gmra.mxu0 %vm217_vm0, %v158_v52  ;;  %1170 = vmatmul.msk.f32.gmra.mxu1 %vm217_vm0, %v174_v53  ;;  %v86_v52 = vld [vmem:[%s2909_s3 + $0x18] sm:$0xff] }
  0x6d   :  { %1187 = vmatmul.msk.f32.gmra.mxu2 %vm217_vm0, %v191_v55  ;;  %1203 = vmatmul.msk.f32.gmra.mxu3 %vm217_vm0, %v207_v56 }
  0x6f   :  { %1155 = vmatmul.msk.f32.gmra.mxu0 %vm217_vm0, %v159_v57  ;;  %1171 = vmatmul.msk.f32.gmra.mxu1 %vm217_vm0, %v175_v58 }
  0x75   :  { %1188 = vmatmul.msk.f32.gmra.mxu2 %vm217_vm0, %v192_v59  ;;  %1204 = vmatmul.msk.f32.gmra.mxu3 %vm217_vm0, %v208_v60 }
  0x77   :  { %1156 = vmatmul.msk.f32.gmra.mxu0 %vm217_vm0, %v160_v61  ;;  %1172 = vmatmul.msk.f32.gmra.mxu1 %vm217_vm0, %v176_v62 }
  0x7d   :  { %1189 = vmatmul.msk.f32.gmra.mxu2 %vm217_vm0, %v193_v63  ;;  %1205 = vmatmul.msk.f32.gmra.mxu3 %vm217_vm0, %v209_v0 }
  0x7f   :  { %1157 = vmatmul.msk.f32.gmra.mxu0 %vm217_vm0, %v161_v1  ;;  %1173 = vmatmul.msk.f32.gmra.mxu1 %vm217_vm0, %v177_v2 }
  0x85   :  { %1190 = vmatmul.msk.f32.gmra.mxu2 %vm217_vm0, %v194_v3  ;;  %1206 = vmatmul.msk.f32.gmra.mxu3 %vm217_vm0, %v210_v4 }
  0x87   :  { %1158 = vmatmul.msk.f32.gmra.mxu0 %vm217_vm0, %v162_v5  ;;  %1174 = vmatmul.msk.f32.gmra.mxu1 %vm217_vm0, %v178_v6 }
  0x8c   :  { %v427_v8 = vpop.f32.mrf.mxu0  ;;  %v475_v9 = vpop.f32.mrf.mxu1 }
  0x8d   :  { %v619_v10 = vadd.f32 %v427_v8, %v83_v7  ;;  %v635_v31 = vadd.f32 %v475_v9, %v99_v26 }
  0x8f   :  { %684 = vst.msk [vmem:[%s2909_s3] sm:$0xff] %vm18_vm1, %v619_v10 }
  0x90   :  { %v523_v11 = vpop.f32.mrf.mxu2  ;;  %v571_v12 = vpop.f32.mrf.mxu3  ;;  %700 = vst.msk [vmem:[%s2909_s3 + $0x80] sm:$0xff] %vm18_vm1, %v635_v31 }
  0x91   :  { %v651_v33 = vadd.f32 %v523_v11, %v115_v27  ;;  %v667_v35 = vadd.f32 %v571_v12, %v131_v28 }
  0x93   :  { %716 = vst.msk [vmem:[%s2909_s3 + $0x100] sm:$0xff] %vm18_vm1, %v651_v33 }
  0x94   :  { %v430_v14 = vpop.f32.mrf.mxu0  ;;  %v478_v15 = vpop.f32.mrf.mxu1  ;;  %732 = vst.msk [vmem:[%s2909_s3 + $0x180] sm:$0xff] %vm18_vm1, %v667_v35 }
  0x95   :  { %v620_v37 = vadd.f32 %v430_v14, %v84_v32  ;;  %v636_v41 = vadd.f32 %v478_v15, %v100_v34 }
  0x96   :  { %v751_v16 = vld [vmem:[%s2909_s3] sm:$0xff] }
  0x97   :  { %v819_v17 = vadd.f32 %v1748_v13, %v751_v16  ;;  %685 = vst.msk [vmem:[%s2909_s3 + $0x8] sm:$0xff] %vm18_vm1, %v620_v37  ;;  %v767_v56 = vld [vmem:[%s2909_s3 + $0x80] sm:$0xff] }
  0x98   :  { %v526_v18 = vpop.f32.mrf.mxu2  ;;  %v574_v19 = vpop.f32.mrf.mxu3  ;;  %701 = vst.msk [vmem:[%s2909_s3 + $0x88] sm:$0xff] %vm18_vm1, %v636_v41  ;;  %v835_v60 = vadd.f32 %v1748_v13, %v767_v56 }
  0x99   :  { %vm883_vm2 = vcmp.ge.f32.partialorder %v819_v17, 0.0  ;;  %v947_v20 = vmul.f32 0.2, %v819_v17  ;;  %v652_v43 = vadd.f32 %v526_v18, %v116_v36  ;;  %v668_v45 = vadd.f32 %v574_v19, %v132_v38 }
  0x9a   :  { %v783_v61 = vld [vmem:[%s2909_s3 + $0x100] sm:$0xff]  ;;  %vm899_vm3 = vcmp.ge.f32.partialorder %v835_v60, 0.0  ;;  %v963_v1 = vmul.f32 0.2, %v835_v60 }
  0x9b   :  { %v1011_v21 = vsel %vm883_vm2, %v819_v17, %v947_v20  ;;  %717 = vst.msk [vmem:[%s2909_s3 + $0x108] sm:$0xff] %vm18_vm1, %v652_v43  ;;  %v851_v63 = vadd.f32 %v1748_v13, %v783_v61  ;;  %v799_v0 = vld [vmem:[%s2909_s3 + $0x180] sm:$0xff] }
  0x9c   :  { %1075 = vst.msk [vmem:[%s2909_s3] sm:$0xff] %vm18_vm1, %v1011_v21  ;;  %v433_v22 = vpop.f32.mrf.mxu0  ;;  %v481_v23 = vpop.f32.mrf.mxu1  ;;  %v867_v2 = vadd.f32 %v1748_v13, %v799_v0  ;;  %v1027_v9 = vsel %vm899_vm3, %v835_v60, %v963_v1 }
  0x9d   :  { %v621_v47 = vadd.f32 %v433_v22, %v85_v42  ;;  %v637_v51 = vadd.f32 %v481_v23, %v101_v44  ;;  %733 = vst.msk [vmem:[%s2909_s3 + $0x188] sm:$0xff] %vm18_vm1, %v668_v45  ;;  %vm915_vm4 = vcmp.ge.f32.partialorder %v851_v63, 0.0  ;;  %v979_v4 = vmul.f32 0.2, %v851_v63 }
  0x9e   :  { %v752_v3 = vld [vmem:[%s2909_s3 + $0x8] sm:$0xff]  ;;  %vm931_vm5 = vcmp.ge.f32.partialorder %v867_v2, 0.0  ;;  %v995_v10 = vmul.f32 0.2, %v867_v2  ;;  %1091 = vst.msk [vmem:[%s2909_s3 + $0x80] sm:$0xff] %vm18_vm1, %v1027_v9 }
  0x9f   :  { %686 = vst.msk [vmem:[%s2909_s3 + $0x10] sm:$0xff] %vm18_vm1, %v621_v47  ;;  %v820_v5 = vadd.f32 %v1748_v13, %v752_v3  ;;  %v768_v6 = vld [vmem:[%s2909_s3 + $0x88] sm:$0xff]  ;;  %v1043_v14 = vsel %vm915_vm4, %v851_v63, %v979_v4  ;;  %v103_v63 = vld [vmem:[%s2909_s3 + $0xa0] sm:$0xff] }
  0xa0   :  { %v529_v24 = vpop.f32.mrf.mxu2  ;;  %v577_v25 = vpop.f32.mrf.mxu3  ;;  %702 = vst.msk [vmem:[%s2909_s3 + $0x90] sm:$0xff] %vm18_vm1, %v637_v51  ;;  %v836_v11 = vadd.f32 %v1748_v13, %v768_v6  ;;  %v1059_v18 = vsel %vm931_vm5, %v867_v2, %v995_v10  ;;  %v119_v2 = vld [vmem:[%s2909_s3 + $0x120] sm:$0xff]  ;;  %v88_v9 = vld [vmem:[%s2909_s3 + $0x28] sm:$0xff] }
  0xa1   :  { %v653_v53 = vadd.f32 %v529_v24, %v117_v46  ;;  %v669_v55 = vadd.f32 %v577_v25, %v133_v48  ;;  %vm884_vm6 = vcmp.ge.f32.partialorder %v820_v5, 0.0  ;;  %v948_v15 = vmul.f32 0.2, %v820_v5  ;;  %1107 = vst.msk [vmem:[%s2909_s3 + $0x100] sm:$0xff] %vm18_vm1, %v1043_v14  ;;  %v118_v46 = vld [vmem:[%s2909_s3 + $0x118] sm:$0xff]  ;;  %v135_v6 = vld [vmem:[%s2909_s3 + $0x1a0] sm:$0xff] }
  0xa2   :  { %v784_v12 = vld [vmem:[%s2909_s3 + $0x108] sm:$0xff]  ;;  %vm900_vm7 = vcmp.ge.f32.partialorder %v836_v11, 0.0  ;;  %v964_v19 = vmul.f32 0.2, %v836_v11  ;;  %1123 = vst.msk [vmem:[%s2909_s3 + $0x180] sm:$0xff] %vm18_vm1, %v1059_v18  ;;  %v121_v18 = vld [vmem:[%s2909_s3 + $0x130] sm:$0xff] }
  0xa3   :  { %718 = vst.msk [vmem:[%s2909_s3 + $0x110] sm:$0xff] %vm18_vm1, %v653_v53  ;;  %v852_v16 = vadd.f32 %v1748_v13, %v784_v12  ;;  %v1012_v22 = vsel %vm884_vm6, %v820_v5, %v948_v15  ;;  %v104_v10 = vld [vmem:[%s2909_s3 + $0xa8] sm:$0xff] }
  0xa4   :  { %v436_v29 = vpop.f32.mrf.mxu0  ;;  %v484_v30 = vpop.f32.mrf.mxu1  ;;  %734 = vst.msk [vmem:[%s2909_s3 + $0x190] sm:$0xff] %vm18_vm1, %v669_v55  ;;  %v800_v17 = vld [vmem:[%s2909_s3 + $0x188] sm:$0xff]  ;;  %v1028_v28 = vsel %vm900_vm7, %v836_v11, %v964_v19 }
  0xa5   :  { %v622_v57 = vadd.f32 %v436_v29, %v86_v52  ;;  %v638_v62 = vadd.f32 %v484_v30, %v102_v54  ;;  %v868_v20 = vadd.f32 %v1748_v13, %v800_v17  ;;  %vm916_vm8 = vcmp.ge.f32.partialorder %v852_v16, 0.0  ;;  %1076 = vst.msk [vmem:[%s2909_s3 + $0x8] sm:$0xff] %vm18_vm1, %v1012_v22  ;;  %v134_v54 = vld [vmem:[%s2909_s3 + $0x198] sm:$0xff]  ;;  %v120_v11 = vld [vmem:[%s2909_s3 + $0x128] sm:$0xff]  ;;  %v105_v17 = vld [vmem:[%s2909_s3 + $0xb0] sm:$0xff] }
  0xa6   :  { %v753_v21 = vld [vmem:[%s2909_s3 + $0x10] sm:$0xff]  ;;  %v980_v23 = vmul.f32 0.2, %v852_v16  ;;  %1092 = vst.msk [vmem:[%s2909_s3 + $0x88] sm:$0xff] %vm18_vm1, %v1028_v28  ;;  %v136_v15 = vld [vmem:[%s2909_s3 + $0x1a8] sm:$0xff] }
  0xa7   :  { %687 = vst.msk [vmem:[%s2909_s3 + $0x18] sm:$0xff] %vm18_vm1, %v622_v57  ;;  %v821_v24 = vadd.f32 %v1748_v13, %v753_v21  ;;  %v769_v25 = vld [vmem:[%s2909_s3 + $0x90] sm:$0xff]  ;;  %vm932_vm9 = vcmp.ge.f32.partialorder %v868_v20, 0.0  ;;  %v996_v29 = vmul.f32 0.2, %v868_v20  ;;  %v87_v57 = vld [vmem:[%s2909_s3 + $0x20] sm:$0xff] }
  0xa8   :  { %v1884_v39 = vpop.f32.mrf.mxu2  ;;  %v1886_v40 = vpop.f32.mrf.mxu3  ;;  %703 = vst.msk [vmem:[%s2909_s3 + $0x98] sm:$0xff] %vm18_vm1, %v638_v62  ;;  %v837_v30 = vadd.f32 %v1748_v13, %v769_v25  ;;  %v1044_v32 = vsel %vm916_vm8, %v852_v16, %v980_v23  ;;  %v89_v16 = vld [vmem:[%s2909_s3 + $0x30] sm:$0xff] }
  0xa9   :  { %vm885_vm10 = vcmp.ge.f32.partialorder %v821_v24, 0.0  ;;  %v949_v33 = vmul.f32 0.2, %v821_v24  ;;  %1108 = vst.msk [vmem:[%s2909_s3 + $0x108] sm:$0xff] %vm18_vm1, %v1044_v32  ;;  %v1060_v36 = vsel %vm932_vm9, %v868_v20, %v996_v29  ;;  %v654_v62 = vadd.f32 %v1884_v39, %v118_v46 }
  0xaa   :  { %v785_v31 = vld [vmem:[%s2909_s3 + $0x110] sm:$0xff]  ;;  %vm901_vm11 = vcmp.ge.f32.partialorder %v837_v30, 0.0  ;;  %v965_v37 = vmul.f32 0.2, %v837_v30  ;;  %1124 = vst.msk [vmem:[%s2909_s3 + $0x188] sm:$0xff] %vm18_vm1, %v1060_v36  ;;  %v670_v1 = vadd.f32 %v1886_v40, %v134_v54 }
  0xab   :  { %v853_v34 = vadd.f32 %v1748_v13, %v785_v31  ;;  %v801_v35 = vld [vmem:[%s2909_s3 + $0x190] sm:$0xff]  ;;  %v1013_v42 = vsel %vm885_vm10, %v821_v24, %v949_v33  ;;  %719 = vst.msk [vmem:[%s2909_s3 + $0x118] sm:$0xff] %vm18_vm1, %v654_v62 }
  0xac   :  { %v1916_v49 = vpop.f32.mrf.mxu0  ;;  %v1918_v50 = vpop.f32.mrf.mxu1  ;;  %v869_v38 = vadd.f32 %v1748_v13, %v801_v35  ;;  %1077 = vst.msk [vmem:[%s2909_s3 + $0x10] sm:$0xff] %vm18_vm1, %v1013_v42  ;;  %v1029_v51 = vsel %vm901_vm11, %v837_v30, %v965_v37 }
  0xad   :  { %vm917_vm12 = vcmp.ge.f32.partialorder %v853_v34, 0.0  ;;  %v981_v43 = vmul.f32 0.2, %v853_v34  ;;  %1093 = vst.msk [vmem:[%s2909_s3 + $0x90] sm:$0xff] %vm18_vm1, %v1029_v51  ;;  %v623_v5 = vadd.f32 %v1916_v49, %v87_v57  ;;  %v639_v40 = vadd.f32 %v1918_v50, %v103_v63 }
  0xae   :  { %v754_v41 = vld [vmem:[%s2909_s3 + $0x18] sm:$0xff]  ;;  %vm933_vm13 = vcmp.ge.f32.partialorder %v869_v38, 0.0  ;;  %v997_v52 = vmul.f32 0.2, %v869_v38  ;;  %735 = vst.msk [vmem:[%s2909_s3 + $0x198] sm:$0xff] %vm18_vm1, %v670_v1 }
  0xaf   :  { %v822_v44 = vadd.f32 %v1748_v13, %v754_v41  ;;  %v770_v45 = vld [vmem:[%s2909_s3 + $0x98] sm:$0xff]  ;;  %v1045_v55 = vsel %vm917_vm12, %v853_v34, %v981_v43  ;;  %688 = vst.msk [vmem:[%s2909_s3 + $0x20] sm:$0xff] %vm18_vm1, %v623_v5 }
  0xb0   :  { %v1945_v58 = vpop.f32.mrf.mxu2  ;;  %v1947_v59 = vpop.f32.mrf.mxu3  ;;  %v838_v53 = vadd.f32 %v1748_v13, %v770_v45  ;;  %1109 = vst.msk [vmem:[%s2909_s3 + $0x110] sm:$0xff] %vm18_vm1, %v1045_v55  ;;  %v1061_v60 = vsel %vm933_vm13, %v869_v38, %v997_v52 }
  0xb1   :  { %vm886_vm14 = vcmp.ge.f32.partialorder %v822_v44, 0.0  ;;  %v950_v56 = vmul.f32 0.2, %v822_v44  ;;  %1125 = vst.msk [vmem:[%s2909_s3 + $0x190] sm:$0xff] %vm18_vm1, %v1061_v60  ;;  %v655_v49 = vadd.f32 %v1945_v58, %v119_v2  ;;  %v671_v50 = vadd.f32 %v1947_v59, %v135_v6 }
  0xb2   :  { %vm902_vm15 = vcmp.ge.f32.partialorder %v838_v53, 0.0  ;;  %v966_v61 = vmul.f32 0.2, %v838_v53  ;;  %704 = vst.msk [vmem:[%s2909_s3 + $0xa0] sm:$0xff] %vm18_vm1, %v639_v40  ;;  %v786_v22 = vld [vmem:[%s2909_s3 + $0x118] sm:$0xff] }
  0xb3   :  { %v1014_v0 = vsel %vm886_vm14, %v822_v44, %v950_v56  ;;  %720 = vst.msk [vmem:[%s2909_s3 + $0x120] sm:$0xff] %vm18_vm1, %v655_v49  ;;  %v854_v24 = vadd.f32 %v1748_v13, %v786_v22  ;;  %v106_v22 = vld [vmem:[%s2909_s3 + $0xb8] sm:$0xff] }
  0xb4   :  { %v1981_v7 = vpop.f32.mrf.mxu0  ;;  %v1983_v8 = vpop.f32.mrf.mxu1  ;;  %1078 = vst.msk [vmem:[%s2909_s3 + $0x18] sm:$0xff] %vm18_vm1, %v1014_v0  ;;  %v1030_v39 = vsel %vm902_vm15, %v838_v53, %v966_v61 }
  0xb5   :  { %1094 = vst.msk [vmem:[%s2909_s3 + $0x98] sm:$0xff] %vm18_vm1, %v1030_v39  ;;  %v624_v58 = vadd.f32 %v1981_v7, %v88_v9  ;;  %v640_v59 = vadd.f32 %v1983_v8, %v104_v10  ;;  %v802_v25 = vld [vmem:[%s2909_s3 + $0x198] sm:$0xff]  ;;  %vm918_vm0 = vcmp.ge.f32.partialorder %v854_v24, 0.0  ;;  %v982_v31 = vmul.f32 0.2, %v854_v24 }
  0xb6   :  { %736 = vst.msk [vmem:[%s2909_s3 + $0x1a0] sm:$0xff] %vm18_vm1, %v671_v50  ;;  %v755_v28 = vld [vmem:[%s2909_s3 + $0x20] sm:$0xff] }
  0xb7   :  { %689 = vst.msk [vmem:[%s2909_s3 + $0x28] sm:$0xff] %vm18_vm1, %v624_v58  ;;  %v823_v32 = vadd.f32 %v1748_v13, %v755_v28  ;;  %v1046_v37 = vsel %vm918_vm0, %v854_v24, %v982_v31  ;;  %v122_v28 = vld [vmem:[%s2909_s3 + $0x138] sm:$0xff] }
  0xb8   :  { %v2017_v26 = vpop.f32.mrf.mxu2  ;;  %v2019_v27 = vpop.f32.mrf.mxu3  ;;  %705 = vst.msk [vmem:[%s2909_s3 + $0xa8] sm:$0xff] %vm18_vm1, %v640_v59 }
  0xb9   :  { %v656_v7 = vadd.f32 %v2017_v26, %v120_v11  ;;  %v672_v8 = vadd.f32 %v2019_v27, %v136_v15  ;;  %v870_v27 = vadd.f32 %v1748_v13, %v802_v25  ;;  %v771_v33 = vld [vmem:[%s2909_s3 + $0xa0] sm:$0xff]  ;;  %vm887_vm3 = vcmp.ge.f32.partialorder %v823_v32, 0.0  ;;  %1110 = vst.msk [vmem:[%s2909_s3 + $0x118] sm:$0xff] %vm18_vm1, %v1046_v37  ;;  %v137_v15 = vld [vmem:[%s2909_s3 + $0x1b0] sm:$0xff] }
  0xba   :  { %v839_v35 = vadd.f32 %v1748_v13, %v771_v33  ;;  %v787_v36 = vld [vmem:[%s2909_s3 + $0x120] sm:$0xff]  ;;  %v951_v38 = vmul.f32 0.2, %v823_v32  ;;  %v138_v33 = vld [vmem:[%s2909_s3 + $0x1b8] sm:$0xff] }
  0xbb   :  { %721 = vst.msk [vmem:[%s2909_s3 + $0x128] sm:$0xff] %vm18_vm1, %v656_v7  ;;  %vm934_vm2 = vcmp.ge.f32.partialorder %v870_v27, 0.0  ;;  %v998_v34 = vmul.f32 0.2, %v870_v27  ;;  %v855_v41 = vadd.f32 %v1748_v13, %v787_v36  ;;  %v107_v36 = vld [vmem:[%s2909_s3 + $0xc0] sm:$0xff] }
  0xbc   :  { %v445_v47 = vpop.f32.mrf.mxu0  ;;  %v493_v48 = vpop.f32.mrf.mxu1  ;;  %737 = vst.msk [vmem:[%s2909_s3 + $0x1a8] sm:$0xff] %vm18_vm1, %v672_v8  ;;  %vm903_vm4 = vcmp.ge.f32.partialorder %v839_v35, 0.0  ;;  %v967_v44 = vmul.f32 0.2, %v839_v35  ;;  %v1015_v51 = vsel %vm887_vm3, %v823_v32, %v951_v38  ;;  %v90_v8 = vld [vmem:[%s2909_s3 + $0x38] sm:$0xff]  ;;  %v123_v37 = vld [vmem:[%s2909_s3 + $0x140] sm:$0xff] }
  0xbd   :  { %v625_v21 = vadd.f32 %v445_v47, %v89_v16  ;;  %v641_v23 = vadd.f32 %v493_v48, %v105_v17  ;;  %v803_v42 = vld [vmem:[%s2909_s3 + $0x1a0] sm:$0xff]  ;;  %v1062_v43 = vsel %vm934_vm2, %v870_v27, %v998_v34  ;;  %vm919_vm5 = vcmp.ge.f32.partialorder %v855_v41, 0.0  ;;  %1079 = vst.msk [vmem:[%s2909_s3 + $0x20] sm:$0xff] %vm18_vm1, %v1015_v51  ;;  %v140_v51 = vld [vmem:[%s2909_s3 + $0x1c8] sm:$0xff] }
  0xbe   :  { %v871_v45 = vadd.f32 %v1748_v13, %v803_v42  ;;  %v756_v46 = vld [vmem:[%s2909_s3 + $0x28] sm:$0xff]  ;;  %1126 = vst.msk [vmem:[%s2909_s3 + $0x198] sm:$0xff] %vm18_vm1, %v1062_v43  ;;  %v983_v52 = vmul.f32 0.2, %v855_v41  ;;  %v1031_v55 = vsel %vm903_vm4, %v839_v35, %v967_v44  ;;  %v91_v35 = vld [vmem:[%s2909_s3 + $0x40] sm:$0xff] }
  0xbf   :  { %690 = vst.msk [vmem:[%s2909_s3 + $0x30] sm:$0xff] %vm18_vm1, %v625_v21  ;;  %v824_v53 = vadd.f32 %v1748_v13, %v756_v46  ;;  %v772_v54 = vld [vmem:[%s2909_s3 + $0xa8] sm:$0xff]  ;;  %v139_v38 = vld [vmem:[%s2909_s3 + $0x1c0] sm:$0xff] }
  0xc0   :  { %v541_v3 = vpop.f32.mrf.mxu2  ;;  %v2087_v4 = vpop.f32.mrf.mxu3  ;;  %706 = vst.msk [vmem:[%s2909_s3 + $0xb0] sm:$0xff] %vm18_vm1, %v641_v23  ;;  %vm935_vm6 = vcmp.ge.f32.partialorder %v871_v45, 0.0  ;;  %v999_v56 = vmul.f32 0.2, %v871_v45  ;;  %v840_v57 = vadd.f32 %v1748_v13, %v772_v54  ;;  %v1047_v61 = vsel %vm919_vm5, %v855_v41, %v983_v52  ;;  %v92_v42 = vld [vmem:[%s2909_s3 + $0x48] sm:$0xff] }
  0xc1   :  { %v657_v26 = vadd.f32 %v541_v3, %v121_v18  ;;  %1095 = vst.msk [vmem:[%s2909_s3 + $0xa0] sm:$0xff] %vm18_vm1, %v1031_v55  ;;  %vm888_vm7 = vcmp.ge.f32.partialorder %v824_v53, 0.0  ;;  %v952_v62 = vmul.f32 0.2, %v824_v53  ;;  %v673_v27 = vadd.f32 %v2087_v4, %v137_v15  ;;  %v108_v43 = vld [vmem:[%s2909_s3 + $0xc8] sm:$0xff] }
  0xc2   :  { %v788_v60 = vld [vmem:[%s2909_s3 + $0x128] sm:$0xff]  ;;  %1111 = vst.msk [vmem:[%s2909_s3 + $0x120] sm:$0xff] %vm18_vm1, %v1047_v61  ;;  %v1063_v1 = vsel %vm935_vm6, %v871_v45, %v999_v56  ;;  %vm904_vm8 = vcmp.ge.f32.partialorder %v840_v57, 0.0  ;;  %v968_v2 = vmul.f32 0.2, %v840_v57 }
  0xc3   :  { %722 = vst.msk [vmem:[%s2909_s3 + $0x130] sm:$0xff] %vm18_vm1, %v657_v26  ;;  %v856_v63 = vadd.f32 %v1748_v13, %v788_v60  ;;  %v804_v0 = vld [vmem:[%s2909_s3 + $0x1a8] sm:$0xff]  ;;  %v1016_v6 = vsel %vm888_vm7, %v824_v53, %v952_v62 }
  0xc4   :  { %v2121_v12 = vpop.f32.mrf.mxu0  ;;  %v2123_v14 = vpop.f32.mrf.mxu1  ;;  %v872_v3 = vadd.f32 %v1748_v13, %v804_v0  ;;  %1127 = vst.msk [vmem:[%s2909_s3 + $0x1a0] sm:$0xff] %vm18_vm1, %v1063_v1  ;;  %v1032_v10 = vsel %vm904_vm8, %v840_v57, %v968_v2  ;;  %v124_v45 = vld [vmem:[%s2909_s3 + $0x148] sm:$0xff] }
  0xc5   :  { %vm920_vm9 = vcmp.ge.f32.partialorder %v856_v63, 0.0  ;;  %v984_v40 = vmul.f32 0.2, %v856_v63  ;;  %1080 = vst.msk [vmem:[%s2909_s3 + $0x28] sm:$0xff] %vm18_vm1, %v1016_v6  ;;  %v626_v32 = vadd.f32 %v2121_v12, %v90_v8  ;;  %v642_v34 = vadd.f32 %v2123_v14, %v106_v22 }
  0xc6   :  { %v757_v39 = vld [vmem:[%s2909_s3 + $0x30] sm:$0xff]  ;;  %vm936_vm10 = vcmp.ge.f32.partialorder %v872_v3, 0.0  ;;  %v1000_v50 = vmul.f32 0.2, %v872_v3  ;;  %1096 = vst.msk [vmem:[%s2909_s3 + $0xa8] sm:$0xff] %vm18_vm1, %v1032_v10 }
  0xc7   :  { %v825_v9 = vadd.f32 %v1748_v13, %v757_v39  ;;  %v773_v49 = vld [vmem:[%s2909_s3 + $0xb0] sm:$0xff]  ;;  %v1048_v16 = vsel %vm920_vm9, %v856_v63, %v984_v40  ;;  %738 = vst.msk [vmem:[%s2909_s3 + $0x1b0] sm:$0xff] %vm18_vm1, %v673_v27 }
  0xc8   :  { %v2157_v19 = vpop.f32.mrf.mxu2  ;;  %v2159_v20 = vpop.f32.mrf.mxu3  ;;  %v841_v11 = vadd.f32 %v1748_v13, %v773_v49  ;;  %1112 = vst.msk [vmem:[%s2909_s3 + $0x128] sm:$0xff] %vm18_vm1, %v1048_v16  ;;  %v1064_v18 = vsel %vm936_vm10, %v872_v3, %v1000_v50 }
  0xc9   :  { %vm889_vm11 = vcmp.ge.f32.partialorder %v825_v9, 0.0  ;;  %v953_v7 = vmul.f32 0.2, %v825_v9  ;;  %1128 = vst.msk [vmem:[%s2909_s3 + $0x1a8] sm:$0xff] %vm18_vm1, %v1064_v18  ;;  %v658_v12 = vadd.f32 %v2157_v19, %v122_v28  ;;  %v674_v14 = vadd.f32 %v2159_v20, %v138_v33 }
  0xca   :  { %v789_v58 = vld [vmem:[%s2909_s3 + $0x130] sm:$0xff]  ;;  %vm905_vm12 = vcmp.ge.f32.partialorder %v841_v11, 0.0  ;;  %v969_v21 = vmul.f32 0.2, %v841_v11  ;;  %691 = vst.msk [vmem:[%s2909_s3 + $0x38] sm:$0xff] %vm18_vm1, %v626_v32 }
  0xcb   :  { %v857_v17 = vadd.f32 %v1748_v13, %v789_v58  ;;  %v1017_v25 = vsel %vm889_vm11, %v825_v9, %v953_v7  ;;  %707 = vst.msk [vmem:[%s2909_s3 + $0xb8] sm:$0xff] %vm18_vm1, %v642_v34 }
  0xcc   :  { %v2188_v29 = vpop.f32.mrf.mxu0  ;;  %v2190_v30 = vpop.f32.mrf.mxu1  ;;  %1081 = vst.msk [vmem:[%s2909_s3 + $0x30] sm:$0xff] %vm18_vm1, %v1017_v25  ;;  %v1033_v31 = vsel %vm905_vm12, %v841_v11, %v969_v21 }
  0xcd   :  { %vm921_vm13 = vcmp.ge.f32.partialorder %v857_v17, 0.0  ;;  %v985_v26 = vmul.f32 0.2, %v857_v17  ;;  %1097 = vst.msk [vmem:[%s2909_s3 + $0xb0] sm:$0xff] %vm18_vm1, %v1033_v31  ;;  %v627_v19 = vadd.f32 %v2188_v29, %v91_v35  ;;  %v643_v20 = vadd.f32 %v2190_v30, %v107_v36 }
  0xce   :  { %723 = vst.msk [vmem:[%s2909_s3 + $0x138] sm:$0xff] %vm18_vm1, %v658_v12  ;;  %v805_v53 = vld [vmem:[%s2909_s3 + $0x1b0] sm:$0xff] }
  0xcf   :  { %v1049_v4 = vsel %vm921_vm13, %v857_v17, %v985_v26  ;;  %739 = vst.msk [vmem:[%s2909_s3 + $0x1b8] sm:$0xff] %vm18_vm1, %v674_v14  ;;  %v873_v55 = vadd.f32 %v1748_v13, %v805_v53 }
  0xd0   :  { %v2224_v47 = vpop.f32.mrf.mxu2  ;;  %v2226_v48 = vpop.f32.mrf.mxu3  ;;  %1113 = vst.msk [vmem:[%s2909_s3 + $0x130] sm:$0xff] %vm18_vm1, %v1049_v4 }
  0xd1   :  { %v659_v29 = vadd.f32 %v2224_v47, %v123_v37  ;;  %v675_v30 = vadd.f32 %v2226_v48, %v139_v38  ;;  %692 = vst.msk [vmem:[%s2909_s3 + $0x40] sm:$0xff] %vm18_vm1, %v627_v19  ;;  %v758_v56 = vld [vmem:[%s2909_s3 + $0x38] sm:$0xff]  ;;  %vm937_vm14 = vcmp.ge.f32.partialorder %v873_v55, 0.0  ;;  %v1001_v62 = vmul.f32 0.2, %v873_v55  ;;  %v93_v38 = vld [vmem:[%s2909_s3 + $0x50] sm:$0xff] }
  0xd2   :  { %708 = vst.msk [vmem:[%s2909_s3 + $0xc0] sm:$0xff] %vm18_vm1, %v643_v20  ;;  %v826_v60 = vadd.f32 %v1748_v13, %v758_v56  ;;  %v774_v61 = vld [vmem:[%s2909_s3 + $0xb8] sm:$0xff] }
  0xd3   :  { %724 = vst.msk [vmem:[%s2909_s3 + $0x140] sm:$0xff] %vm18_vm1, %v659_v29  ;;  %v842_v63 = vadd.f32 %v1748_v13, %v774_v61 }
  0xd4   :  { %v2260_v5 = vpop.f32.mrf.mxu0  ;;  %v502_v59 = vpop.f32.mrf.mxu1  ;;  %740 = vst.msk [vmem:[%s2909_s3 + $0x1c0] sm:$0xff] %vm18_vm1, %v675_v30  ;;  %vm890_vm15 = vcmp.ge.f32.partialorder %v826_v60, 0.0  ;;  %v954_v1 = vmul.f32 0.2, %v826_v60 }
  0xd5   :  { %v628_v47 = vadd.f32 %v2260_v5, %v92_v42  ;;  %v644_v48 = vadd.f32 %v502_v59, %v108_v43  ;;  %v790_v0 = vld [vmem:[%s2909_s3 + $0x138] sm:$0xff]  ;;  %v1065_v5 = vsel %vm937_vm14, %v873_v55, %v1001_v62  ;;  %vm906_vm0 = vcmp.ge.f32.partialorder %v842_v63, 0.0  ;;  %v109_v43 = vld [vmem:[%s2909_s3 + $0xd0] sm:$0xff] }
  0xd6   :  { %v858_v2 = vadd.f32 %v1748_v13, %v790_v0  ;;  %v806_v3 = vld [vmem:[%s2909_s3 + $0x1b8] sm:$0xff]  ;;  %v970_v6 = vmul.f32 0.2, %v842_v63  ;;  %1129 = vst.msk [vmem:[%s2909_s3 + $0x1b0] sm:$0xff] %vm18_vm1, %v1065_v5  ;;  %v1018_v49 = vsel %vm890_vm15, %v826_v60, %v954_v1  ;;  %v141_v55 = vld [vmem:[%s2909_s3 + $0x1d0] sm:$0xff]  ;;  %v95_v5 = vld [vmem:[%s2909_s3 + $0x60] sm:$0xff] }
  0xd7   :  { %693 = vst.msk [vmem:[%s2909_s3 + $0x48] sm:$0xff] %vm18_vm1, %v628_v47  ;;  %v874_v40 = vadd.f32 %v1748_v13, %v806_v3  ;;  %v125_v47 = vld [vmem:[%s2909_s3 + $0x150] sm:$0xff]  ;;  %v94_v60 = vld [vmem:[%s2909_s3 + $0x58] sm:$0xff] }
  0xd8   :  { %v550_v23 = vpop.f32.mrf.mxu2  ;;  %v598_v24 = vpop.f32.mrf.mxu3  ;;  %709 = vst.msk [vmem:[%s2909_s3 + $0xc8] sm:$0xff] %vm18_vm1, %v644_v48  ;;  %v759_v9 = vld [vmem:[%s2909_s3 + $0x40] sm:$0xff]  ;;  %vm922_vm2 = vcmp.ge.f32.partialorder %v858_v2, 0.0  ;;  %v986_v10 = vmul.f32 0.2, %v858_v2  ;;  %v1034_v15 = vsel %vm906_vm0, %v842_v63, %v970_v6  ;;  %v110_v63 = vld [vmem:[%s2909_s3 + $0xd8] sm:$0xff] }
  0xd9   :  { %v660_v54 = vadd.f32 %v550_v23, %v124_v45  ;;  %v676_v57 = vadd.f32 %v598_v24, %v140_v51  ;;  %v827_v50 = vadd.f32 %v1748_v13, %v759_v9  ;;  %v775_v11 = vld [vmem:[%s2909_s3 + $0xc0] sm:$0xff]  ;;  %1082 = vst.msk [vmem:[%s2909_s3 + $0x38] sm:$0xff] %vm18_vm1, %v1018_v49  ;;  %vm938_vm3 = vcmp.ge.f32.partialorder %v874_v40, 0.0  ;;  %v126_v1 = vld [vmem:[%s2909_s3 + $0x158] sm:$0xff] }
  0xda   :  { %v1002_v59 = vmul.f32 0.2, %v874_v40  ;;  %v843_v16 = vadd.f32 %v1748_v13, %v775_v11  ;;  %v791_v7 = vld [vmem:[%s2909_s3 + $0x140] sm:$0xff]  ;;  %1098 = vst.msk [vmem:[%s2909_s3 + $0xb8] sm:$0xff] %vm18_vm1, %v1034_v15  ;;  %v1050_v8 = vsel %vm922_vm2, %v858_v2, %v986_v10  ;;  %v142_v3 = vld [vmem:[%s2909_s3 + $0x1d8] sm:$0xff]  ;;  %v96_v11 = vld [vmem:[%s2909_s3 + $0x68] sm:$0xff] }
  0xdb   :  { %725 = vst.msk [vmem:[%s2909_s3 + $0x148] sm:$0xff] %vm18_vm1, %v660_v54  ;;  %vm891_vm4 = vcmp.ge.f32.partialorder %v827_v50, 0.0  ;;  %v955_v18 = vmul.f32 0.2, %v827_v50  ;;  %v859_v21 = vadd.f32 %v1748_v13, %v791_v7  ;;  %v807_v22 = vld [vmem:[%s2909_s3 + $0x1c0] sm:$0xff] }
  0xdc   :  { %v2344_v41 = vpop.f32.mrf.mxu0  ;;  %v2362_v44 = vpop.f32.mrf.mxu1  ;;  %741 = vst.msk [vmem:[%s2909_s3 + $0x1c8] sm:$0xff] %vm18_vm1, %v676_v57  ;;  %v1066_v24 = vsel %vm938_vm3, %v874_v40, %v1002_v59  ;;  %vm907_vm5 = vcmp.ge.f32.partialorder %v843_v16, 0.0  ;;  %v971_v25 = vmul.f32 0.2, %v843_v16  ;;  %v875_v26 = vadd.f32 %v1748_v13, %v807_v22  ;;  %v111_v6 = vld [vmem:[%s2909_s3 + $0xe0] sm:$0xff] }
  0xdd   :  { %1114 = vst.msk [vmem:[%s2909_s3 + $0x138] sm:$0xff] %vm18_vm1, %v1050_v8  ;;  %v1019_v28 = vsel %vm891_vm4, %v827_v50, %v955_v18  ;;  %vm923_vm6 = vcmp.ge.f32.partialorder %v859_v21, 0.0  ;;  %v987_v31 = vmul.f32 0.2, %v859_v21  ;;  %v629_v54 = vadd.f32 %v2344_v41, %v93_v38  ;;  %v127_v9 = vld [vmem:[%s2909_s3 + $0x160] sm:$0xff] }
  0xde   :  { %v760_v27 = vld [vmem:[%s2909_s3 + $0x48] sm:$0xff]  ;;  %1130 = vst.msk [vmem:[%s2909_s3 + $0x1b8] sm:$0xff] %vm18_vm1, %v1066_v24  ;;  %v1035_v4 = vsel %vm907_vm5, %v843_v16, %v971_v25  ;;  %vm939_vm7 = vcmp.ge.f32.partialorder %v875_v26, 0.0  ;;  %v1003_v34 = vmul.f32 0.2, %v875_v26  ;;  %v645_v57 = vadd.f32 %v2362_v44, %v109_v43  ;;  %v143_v10 = vld [vmem:[%s2909_s3 + $0x1e0] sm:$0xff] }
  0xdf   :  { %v828_v32 = vadd.f32 %v1748_v13, %v760_v27  ;;  %v776_v33 = vld [vmem:[%s2909_s3 + $0xc8] sm:$0xff]  ;;  %1083 = vst.msk [vmem:[%s2909_s3 + $0x40] sm:$0xff] %vm18_vm1, %v1019_v28  ;;  %v1051_v36 = vsel %vm923_vm6, %v859_v21, %v987_v31 }
  0xe0   :  { %v2372_v46 = vpop.f32.mrf.mxu2  ;;  %v2382_v52 = vpop.f32.mrf.mxu3  ;;  %v844_v35 = vadd.f32 %v1748_v13, %v776_v33  ;;  %1099 = vst.msk [vmem:[%s2909_s3 + $0xc0] sm:$0xff] %vm18_vm1, %v1035_v4  ;;  %v1067_v20 = vsel %vm939_vm7, %v875_v26, %v1003_v34 }
  0xe1   :  { %vm892_vm8 = vcmp.ge.f32.partialorder %v828_v32, 0.0  ;;  %v956_v14 = vmul.f32 0.2, %v828_v32  ;;  %1115 = vst.msk [vmem:[%s2909_s3 + $0x140] sm:$0xff] %vm18_vm1, %v1051_v36  ;;  %v661_v62 = vadd.f32 %v2372_v46, %v125_v47  ;;  %v677_v44 = vadd.f32 %v2382_v52, %v141_v55 }
  0xe2   :  { %v792_v12 = vld [vmem:[%s2909_s3 + $0x148] sm:$0xff]  ;;  %vm908_vm9 = vcmp.ge.f32.partialorder %v844_v35, 0.0  ;;  %v972_v42 = vmul.f32 0.2, %v844_v35  ;;  %1131 = vst.msk [vmem:[%s2909_s3 + $0x1c0] sm:$0xff] %vm18_vm1, %v1067_v20 }
  0xe3   :  { %v860_v37 = vadd.f32 %v1748_v13, %v792_v12  ;;  %v808_v19 = vld [vmem:[%s2909_s3 + $0x1c8] sm:$0xff]  ;;  %v1020_v30 = vsel %vm892_vm8, %v828_v32, %v956_v14  ;;  %694 = vst.msk [vmem:[%s2909_s3 + $0x50] sm:$0xff] %vm18_vm1, %v629_v54 }
  0xe4   :  { %v2427_v39 = vpop.f32.mrf.mxu0  ;;  %v2445_v58 = vpop.f32.mrf.mxu1  ;;  %v876_v29 = vadd.f32 %v1748_v13, %v808_v19  ;;  %1084 = vst.msk [vmem:[%s2909_s3 + $0x48] sm:$0xff] %vm18_vm1, %v1020_v30  ;;  %v1036_v48 = vsel %vm908_vm9, %v844_v35, %v972_v42 }
  0xe5   :  { %vm924_vm10 = vcmp.ge.f32.partialorder %v860_v37, 0.0  ;;  %v988_v45 = vmul.f32 0.2, %v860_v37  ;;  %1100 = vst.msk [vmem:[%s2909_s3 + $0xc8] sm:$0xff] %vm18_vm1, %v1036_v48  ;;  %v630_v46 = vadd.f32 %v2427_v39, %v94_v60  ;;  %v646_v52 = vadd.f32 %v2445_v58, %v110_v63 }
  0xe6   :  { %vm940_vm11 = vcmp.ge.f32.partialorder %v876_v29, 0.0  ;;  %v1004_v53 = vmul.f32 0.2, %v876_v29  ;;  %710 = vst.msk [vmem:[%s2909_s3 + $0xd0] sm:$0xff] %vm18_vm1, %v645_v57  ;;  %v2691_v57 = vld [vmem:[%s2908_s2] ss:$0 sm:$0xff] }
  0xe7   :  { %v1052_v56 = vsel %vm924_vm10, %v860_v37, %v988_v45  ;;  %726 = vst.msk [vmem:[%s2909_s3 + $0x150] sm:$0xff] %vm18_vm1, %v661_v62 }
  0xe8   :  { %v2455_v17 = vpop.f32.mrf.mxu2  ;;  %v2465_v23 = vpop.f32.mrf.mxu3  ;;  %1116 = vst.msk [vmem:[%s2909_s3 + $0x148] sm:$0xff] %vm18_vm1, %v1052_v56  ;;  %v1068_v41 = vsel %vm940_vm11, %v876_v29, %v1004_v53 }
  0xe9   :  { %1132 = vst.msk [vmem:[%s2909_s3 + $0x1c8] sm:$0xff] %vm18_vm1, %v1068_v41  ;;  %v662_v39 = vadd.f32 %v2455_v17, %v126_v1  ;;  %v678_v40 = vadd.f32 %v2465_v23, %v142_v3 }
  0xea   :  { %742 = vst.msk [vmem:[%s2909_s3 + $0x1d0] sm:$0xff] %vm18_vm1, %v677_v44  ;;  %v761_v59 = vld [vmem:[%s2909_s3 + $0x50] sm:$0xff] }
  0xeb   :  { %695 = vst.msk [vmem:[%s2909_s3 + $0x58] sm:$0xff] %vm18_vm1, %v630_v46  ;;  %v829_v17 = vadd.f32 %v1748_v13, %v761_v59  ;;  %v97_v59 = vld [vmem:[%s2909_s3 + $0x70] sm:$0xff] }
  0xec   :  { %v463_v51 = vpop.f32.mrf.mxu0  ;;  %v511_v61 = vpop.f32.mrf.mxu1  ;;  %711 = vst.msk [vmem:[%s2909_s3 + $0xd8] sm:$0xff] %vm18_vm1, %v646_v52  ;;  %v112_v52 = vld [vmem:[%s2909_s3 + $0xe8] sm:$0xff] }
  0xed   :  { %v631_v49 = vadd.f32 %v463_v51, %v95_v5  ;;  %v647_v50 = vadd.f32 %v511_v61, %v111_v6  ;;  %727 = vst.msk [vmem:[%s2909_s3 + $0x158] sm:$0xff] %vm18_vm1, %v662_v39  ;;  %v777_v8 = vld [vmem:[%s2909_s3 + $0xd0] sm:$0xff]  ;;  %vm893_vm12 = vcmp.ge.f32.partialorder %v829_v17, 0.0  ;;  %v957_v25 = vmul.f32 0.2, %v829_v17 }
  0xee   :  { %743 = vst.msk [vmem:[%s2909_s3 + $0x1d8] sm:$0xff] %vm18_vm1, %v678_v40  ;;  %v845_v22 = vadd.f32 %v1748_v13, %v777_v8  ;;  %v793_v23 = vld [vmem:[%s2909_s3 + $0x150] sm:$0xff] }
  0xef   :  { %696 = vst.msk [vmem:[%s2909_s3 + $0x60] sm:$0xff] %vm18_vm1, %v631_v49  ;;  %v861_v26 = vadd.f32 %v1748_v13, %v793_v23  ;;  %v1021_v33 = vsel %vm893_vm12, %v829_v17, %v957_v25  ;;  %v113_v8 = vld [vmem:[%s2909_s3 + $0xf0] sm:$0xff]  ;;  %v98_v25 = vld [vmem:[%s2909_s3 + $0x78] sm:$0xff] }
  0xf0   :  { %v559_v0 = vpop.f32.mrf.mxu2  ;;  %v607_v2 = vpop.f32.mrf.mxu3  ;;  %712 = vst.msk [vmem:[%s2909_s3 + $0xe0] sm:$0xff] %vm18_vm1, %v647_v50  ;;  %vm909_vm13 = vcmp.ge.f32.partialorder %v845_v22, 0.0  ;;  %v973_v28 = vmul.f32 0.2, %v845_v22  ;;  %v144_v50 = vld [vmem:[%s2909_s3 + $0x1e8] sm:$0xff]  ;;  %v145_v23 = vld [vmem:[%s2909_s3 + $0x1f0] sm:$0xff] }
  0xf1   :  { %v663_v15 = vadd.f32 %v559_v0, %v127_v9  ;;  %v679_v16 = vadd.f32 %v607_v2, %v143_v10  ;;  %v809_v27 = vld [vmem:[%s2909_s3 + $0x1d0] sm:$0xff]  ;;  %vm925_vm14 = vcmp.ge.f32.partialorder %v861_v26, 0.0  ;;  %v989_v4 = vmul.f32 0.2, %v861_v26  ;;  %1085 = vst.msk [vmem:[%s2909_s3 + $0x50] sm:$0xff] %vm18_vm1, %v1021_v33  ;;  %v128_v9 = vld [vmem:[%s2909_s3 + $0x168] sm:$0xff] }
  0xf2   :  { %v877_v31 = vadd.f32 %v1748_v13, %v809_v27  ;;  %v762_v32 = vld [vmem:[%s2909_s3 + $0x58] sm:$0xff]  ;;  %v1037_v12 = vsel %vm909_vm13, %v845_v22, %v973_v28  ;;  %v129_v22 = vld [vmem:[%s2909_s3 + $0x170] sm:$0xff] }
  0xf3   :  { %728 = vst.msk [vmem:[%s2909_s3 + $0x160] sm:$0xff] %vm18_vm1, %v663_v15  ;;  %v830_v34 = vadd.f32 %v1748_v13, %v762_v32  ;;  %v778_v35 = vld [vmem:[%s2909_s3 + $0xd8] sm:$0xff]  ;;  %v1053_v19 = vsel %vm925_vm14, %v861_v26, %v989_v4 }
  0xf4   :  { %v466_v58 = vpop.f32.mrf.mxu0  ;;  %v2606_v7 = vpop.f32.mrf.mxu1  ;;  %744 = vst.msk [vmem:[%s2909_s3 + $0x1e0] sm:$0xff] %vm18_vm1, %v679_v16  ;;  %vm941_vm15 = vcmp.ge.f32.partialorder %v877_v31, 0.0  ;;  %v1005_v36 = vmul.f32 0.2, %v877_v31  ;;  %v846_v14 = vadd.f32 %v1748_v13, %v778_v35  ;;  %v794_v37 = vld [vmem:[%s2909_s3 + $0x158] sm:$0xff] }
  0xf5   :  { %v632_v18 = vadd.f32 %v466_v58, %v96_v11  ;;  %1101 = vst.msk [vmem:[%s2909_s3 + $0xd0] sm:$0xff] %vm18_vm1, %v1037_v12  ;;  %vm894_vm0 = vcmp.ge.f32.partialorder %v830_v34, 0.0  ;;  %v958_v38 = vmul.f32 0.2, %v830_v34  ;;  %v862_v20 = vadd.f32 %v1748_v13, %v794_v37  ;;  %v810_v42 = vld [vmem:[%s2909_s3 + $0x1d8] sm:$0xff] }
  0xf6   :  { %1117 = vst.msk [vmem:[%s2909_s3 + $0x150] sm:$0xff] %vm18_vm1, %v1053_v19  ;;  %v1069_v29 = vsel %vm941_vm15, %v877_v31, %v1005_v36  ;;  %vm910_vm2 = vcmp.ge.f32.partialorder %v846_v14, 0.0  ;;  %v974_v43 = vmul.f32 0.2, %v846_v14  ;;  %v878_v30 = vadd.f32 %v1748_v13, %v810_v42  ;;  %v763_v45 = vld [vmem:[%s2909_s3 + $0x60] sm:$0xff]  ;;  %v114_v28 = vld [vmem:[%s2909_s3 + $0xf8] sm:$0xff] }
  0xf7   :  { %697 = vst.msk [vmem:[%s2909_s3 + $0x68] sm:$0xff] %vm18_vm1, %v632_v18  ;;  %v1022_v47 = vsel %vm894_vm0, %v830_v34, %v958_v38  ;;  %vm926_vm3 = vcmp.ge.f32.partialorder %v862_v20, 0.0  ;;  %v990_v51 = vmul.f32 0.2, %v862_v20  ;;  %v831_v48 = vadd.f32 %v1748_v13, %v763_v45  ;;  %v779_v53 = vld [vmem:[%s2909_s3 + $0xe0] sm:$0xff]  ;;  %v130_v33 = vld [vmem:[%s2909_s3 + $0x178] sm:$0xff] }
  0xf8   :  { %v2616_v21 = vpop.f32.mrf.mxu2  ;;  %v2626_v24 = vpop.f32.mrf.mxu3  ;;  %1133 = vst.msk [vmem:[%s2909_s3 + $0x1d0] sm:$0xff] %vm18_vm1, %v1069_v29  ;;  %v1038_v55 = vsel %vm910_vm2, %v846_v14, %v974_v43  ;;  %vm942_vm4 = vcmp.ge.f32.partialorder %v878_v30, 0.0  ;;  %v1006_v56 = vmul.f32 0.2, %v878_v30  ;;  %v847_v13 = vadd.f32 %v2691_v57, %v779_v53  ;;  %v146_v35 = vld [vmem:[%s2909_s3 + $0x1f8] sm:$0xff] }
  0xf9   :  { %1086 = vst.msk [vmem:[%s2909_s3 + $0x58] sm:$0xff] %vm18_vm1, %v1022_v47  ;;  %v1054_v41 = vsel %vm926_vm3, %v862_v20, %v990_v51  ;;  %vm895_vm5 = vcmp.ge.f32.partialorder %v831_v48, 0.0  ;;  %v959_v62 = vmul.f32 0.2, %v831_v48  ;;  %v648_v15 = vadd.f32 %v2606_v7, %v112_v52 }
  0xfa   :  { %v795_v60 = vld [vmem:[%s2909_s3 + $0x160] sm:$0xff]  ;;  %1102 = vst.msk [vmem:[%s2909_s3 + $0xd8] sm:$0xff] %vm18_vm1, %v1038_v55  ;;  %v1070_v1 = vsel %vm942_vm4, %v878_v30, %v1006_v56  ;;  %vm911_vm6 = vcmp.ge.f32.partialorder %v847_v13, 0.0  ;;  %v975_v2 = vmul.f32 0.2, %v847_v13  ;;  %v664_v17 = vadd.f32 %v2616_v21, %v128_v9 }
  0xfb   :  { %v863_v63 = vadd.f32 %v2691_v57, %v795_v60  ;;  %v811_v0 = vld [vmem:[%s2909_s3 + $0x1e0] sm:$0xff]  ;;  %1118 = vst.msk [vmem:[%s2909_s3 + $0x158] sm:$0xff] %vm18_vm1, %v1054_v41  ;;  %v1023_v39 = vsel %vm895_vm5, %v831_v48, %v959_v62  ;;  %v680_v18 = vadd.f32 %v2626_v24, %v144_v50 }
  0xfc   :  { %v469_v54 = vpop.f32.mrf.mxu0  ;;  %v517_v61 = vpop.f32.mrf.mxu1  ;;  %v879_v46 = vadd.f32 %v2691_v57, %v811_v0  ;;  %1134 = vst.msk [vmem:[%s2909_s3 + $0x1d8] sm:$0xff] %vm18_vm1, %v1070_v1  ;;  %v1039_v49 = vsel %vm911_vm6, %v847_v13, %v975_v2 }
  0xfd   :  { %vm927_vm7 = vcmp.ge.f32.partialorder %v863_v63, 0.0  ;;  %v991_v6 = vmul.f32 0.2, %v863_v63  ;;  %1087 = vst.msk [vmem:[%s2909_s3 + $0x60] sm:$0xff] %vm18_vm1, %v1023_v39  ;;  %v633_v21 = vadd.f32 %v469_v54, %v97_v59  ;;  %v649_v24 = vadd.f32 %v517_v61, %v113_v8 }
  0xfe   :  { %v764_v3 = vld [vmem:[%s2909_s3 + $0x68] sm:$0xff]  ;;  %vm943_vm8 = vcmp.ge.f32.partialorder %v879_v46, 0.0  ;;  %v1007_v10 = vmul.f32 0.2, %v879_v46  ;;  %1103 = vst.msk [vmem:[%s2909_s3 + $0xe0] sm:$0xff] %vm18_vm1, %v1039_v49 }
  0xff   :  { %v832_v40 = vadd.f32 %v2691_v57, %v764_v3  ;;  %v1055_v11 = vsel %vm927_vm7, %v863_v63, %v991_v6  ;;  %713 = vst.msk [vmem:[%s2909_s3 + $0xe8] sm:$0xff] %vm18_vm1, %v648_v15 }
 0x100   :  { %v565_v44 = vpop.f32.mrf.mxu2  ;;  %v613_v5 = vpop.f32.mrf.mxu3  ;;  %1119 = vst.msk [vmem:[%s2909_s3 + $0x160] sm:$0xff] %vm18_vm1, %v1055_v11  ;;  %v1071_v16 = vsel %vm943_vm8, %v879_v46, %v1007_v10 }
 0x101   :  { %vm896_vm9 = vcmp.ge.f32.partialorder %v832_v40, 0.0  ;;  %v960_v58 = vmul.f32 0.2, %v832_v40  ;;  %1135 = vst.msk [vmem:[%s2909_s3 + $0x1e0] sm:$0xff] %vm18_vm1, %v1071_v16  ;;  %v665_v27 = vadd.f32 %v565_v44, %v129_v22  ;;  %v681_v32 = vadd.f32 %v613_v5, %v145_v23 }
 0x102   :  { %729 = vst.msk [vmem:[%s2909_s3 + $0x168] sm:$0xff] %vm18_vm1, %v664_v17 }
 0x103   :  { %v1024_v7 = vsel %vm896_vm9, %v832_v40, %v960_v58  ;;  %745 = vst.msk [vmem:[%s2909_s3 + $0x1e8] sm:$0xff] %vm18_vm1, %v680_v18 }
 0x104   :  { %1088 = vst.msk [vmem:[%s2909_s3 + $0x68] sm:$0xff] %vm18_vm1, %v1024_v7  ;;  %v472_v26 = vpop.f32.mrf.mxu0  ;;  %v520_v31 = vpop.f32.mrf.mxu1 }
 0x105   :  { %698 = vst.msk [vmem:[%s2909_s3 + $0x70] sm:$0xff] %vm18_vm1, %v633_v21  ;;  %v634_v34 = vadd.f32 %v472_v26, %v98_v25  ;;  %v650_v36 = vadd.f32 %v520_v31, %v114_v28 }
 0x106   :  { %714 = vst.msk [vmem:[%s2909_s3 + $0xf0] sm:$0xff] %vm18_vm1, %v649_v24  ;;  %v780_v19 = vld [vmem:[%s2909_s3 + $0xe8] sm:$0xff] }
 0x107   :  { %730 = vst.msk [vmem:[%s2909_s3 + $0x170] sm:$0xff] %vm18_vm1, %v665_v27  ;;  %v848_v38 = vadd.f32 %v2691_v57, %v780_v19 }
 0x108   :  { %v568_v4 = vpop.f32.mrf.mxu2  ;;  %v616_v12 = vpop.f32.mrf.mxu3  ;;  %746 = vst.msk [vmem:[%s2909_s3 + $0x1f0] sm:$0xff] %vm18_vm1, %v681_v32 }
 0x109   :  { %v666_v14 = vadd.f32 %v568_v4, %v130_v33  ;;  %v682_v37 = vadd.f32 %v616_v12, %v146_v35  ;;  %699 = vst.msk [vmem:[%s2909_s3 + $0x78] sm:$0xff] %vm18_vm1, %v634_v34  ;;  %v796_v20 = vld [vmem:[%s2909_s3 + $0x168] sm:$0xff]  ;;  %vm912_vm10 = vcmp.ge.f32.partialorder %v848_v38, 0.0  ;;  %v976_v43 = vmul.f32 0.2, %v848_v38 }
 0x10a   :  { %715 = vst.msk [vmem:[%s2909_s3 + $0xf8] sm:$0xff] %vm18_vm1, %v650_v36  ;;  %v864_v42 = vadd.f32 %v2691_v57, %v796_v20  ;;  %v812_v29 = vld [vmem:[%s2909_s3 + $0x1e8] sm:$0xff] }
 0x10b   :  { %731 = vst.msk [vmem:[%s2909_s3 + $0x178] sm:$0xff] %vm18_vm1, %v666_v14  ;;  %v880_v30 = vadd.f32 %v2691_v57, %v812_v29  ;;  %v1040_v53 = vsel %vm912_vm10, %v848_v38, %v976_v43 }
 0x10c   :  { %v765_v45 = vld [vmem:[%s2909_s3 + $0x70] sm:$0xff]  ;;  %747 = vst.msk [vmem:[%s2909_s3 + $0x1f8] sm:$0xff] %vm18_vm1, %v682_v37  ;;  %vm928_vm11 = vcmp.ge.f32.partialorder %v864_v42, 0.0  ;;  %v992_v47 = vmul.f32 0.2, %v864_v42 }
 0x10d   :  { %v833_v51 = vadd.f32 %v2691_v57, %v765_v45  ;;  %v781_v48 = vld [vmem:[%s2909_s3 + $0xf0] sm:$0xff]  ;;  %vm944_vm12 = vcmp.ge.f32.partialorder %v880_v30, 0.0  ;;  %v1008_v54 = vmul.f32 0.2, %v880_v30  ;;  %1104 = vst.msk [vmem:[%s2909_s3 + $0xe8] sm:$0xff] %vm18_vm1, %v1040_v53 }
 0x10e   :  { %v849_v55 = vadd.f32 %v2691_v57, %v781_v48  ;;  %v797_v56 = vld [vmem:[%s2909_s3 + $0x170] sm:$0xff]  ;;  %v1056_v13 = vsel %vm928_vm11, %v864_v42, %v992_v47 }
 0x10f   :  { %vm897_vm13 = vcmp.ge.f32.partialorder %v833_v51, 0.0  ;;  %v961_v60 = vmul.f32 0.2, %v833_v51  ;;  %v865_v61 = vadd.f32 %v2691_v57, %v797_v56  ;;  %v813_v41 = vld [vmem:[%s2909_s3 + $0x1f0] sm:$0xff]  ;;  %1120 = vst.msk [vmem:[%s2909_s3 + $0x168] sm:$0xff] %vm18_vm1, %v1056_v13  ;;  %v1072_v62 = vsel %vm944_vm12, %v880_v30, %v1008_v54 }
 0x110   :  { %vm913_vm14 = vcmp.ge.f32.partialorder %v849_v55, 0.0  ;;  %v977_v63 = vmul.f32 0.2, %v849_v55  ;;  %v881_v0 = vadd.f32 %v2691_v57, %v813_v41  ;;  %v766_v44 = vld [vmem:[%s2909_s3 + $0x78] sm:$0xff]  ;;  %1136 = vst.msk [vmem:[%s2909_s3 + $0x1e8] sm:$0xff] %vm18_vm1, %v1072_v62 }
 0x111   :  { %v1025_v1 = vsel %vm897_vm13, %v833_v51, %v961_v60  ;;  %vm929_vm15 = vcmp.ge.f32.partialorder %v865_v61, 0.0  ;;  %v993_v2 = vmul.f32 0.2, %v865_v61  ;;  %v834_v46 = vadd.f32 %v2691_v57, %v766_v44  ;;  %v782_v3 = vld [vmem:[%s2909_s3 + $0xf8] sm:$0xff] }
 0x112   :  { %1089 = vst.msk [vmem:[%s2909_s3 + $0x70] sm:$0xff] %vm18_vm1, %v1025_v1  ;;  %v1041_v52 = vsel %vm913_vm14, %v849_v55, %v977_v63  ;;  %vm945_vm0 = vcmp.ge.f32.partialorder %v881_v0, 0.0  ;;  %v1009_v5 = vmul.f32 0.2, %v881_v0  ;;  %v850_v39 = vadd.f32 %v2691_v57, %v782_v3  ;;  %v798_v6 = vld [vmem:[%s2909_s3 + $0x178] sm:$0xff] }
 0x113   :  { %1105 = vst.msk [vmem:[%s2909_s3 + $0xf0] sm:$0xff] %vm18_vm1, %v1041_v52  ;;  %v1057_v40 = vsel %vm929_vm15, %v865_v61, %v993_v2  ;;  %vm898_vm2 = vcmp.ge.f32.partialorder %v834_v46, 0.0  ;;  %v962_v9 = vmul.f32 0.2, %v834_v46  ;;  %v866_v49 = vadd.f32 %v2691_v57, %v798_v6  ;;  %v814_v10 = vld [vmem:[%s2909_s3 + $0x1f8] sm:$0xff] }
 0x114   :  { %1121 = vst.msk [vmem:[%s2909_s3 + $0x170] sm:$0xff] %vm18_vm1, %v1057_v40  ;;  %v1073_v50 = vsel %vm945_vm0, %v881_v0, %v1009_v5  ;;  %vm914_vm3 = vcmp.ge.f32.partialorder %v850_v39, 0.0  ;;  %v978_v11 = vmul.f32 0.2, %v850_v39  ;;  %v882_v58 = vadd.f32 %v2691_v57, %v814_v10 }
 0x115   :  { %1137 = vst.msk [vmem:[%s2909_s3 + $0x1f0] sm:$0xff] %vm18_vm1, %v1073_v50  ;;  %v1026_v15 = vsel %vm898_vm2, %v834_v46, %v962_v9  ;;  %vm930_vm4 = vcmp.ge.f32.partialorder %v866_v49, 0.0  ;;  %v994_v59 = vmul.f32 0.2, %v866_v49 }
 0x116   :  { %1090 = vst.msk [vmem:[%s2909_s3 + $0x78] sm:$0xff] %vm18_vm1, %v1026_v15  ;;  %v1042_v16 = vsel %vm914_vm3, %v850_v39, %v978_v11  ;;  %vm946_vm5 = vcmp.ge.f32.partialorder %v882_v58, 0.0  ;;  %v1010_v17 = vmul.f32 0.2, %v882_v58 }
 0x117   :  { %1106 = vst.msk [vmem:[%s2909_s3 + $0xf8] sm:$0xff] %vm18_vm1, %v1042_v16  ;;  %v1058_v57 = vsel %vm930_vm4, %v866_v49, %v994_v59 }
 0x118   :  { %1122 = vst.msk [vmem:[%s2909_s3 + $0x178] sm:$0xff] %vm18_vm1, %v1058_v57  ;;  %v1074_v8 = vsel %vm946_vm5, %v882_v58, %v1010_v17 }
 0x119   :  { %1138 = vst.msk [vmem:[%s2909_s3 + $0x1f8] sm:$0xff] %vm18_vm1, %v1074_v8 }

</bundles_post_ra>
